<compile_context>
chip_gen: v7x
topology: tpu7x:2x2x1
jax: 0.10.0
libtpu: 0.0.40
codegen_flags: <defaults>
</compile_context>

<pallas_src>
import functools

import jax
import jax.numpy as jnp
from jax.experimental import pallas as pl
from jax.experimental.pallas import tpu as pltpu


def _round_up(x, m):
    return ((x + m - 1) // m) * m


def _pick_tile_m(M, tm_max):
    if M <= tm_max:
        return M          # single block == full dim (always a legal block shape)
    return tm_max         # multiple of 8; a ragged last tile is masked on store


# -----------------------------------------------------------------------------
# Pallas kernel: fused  out = act(x @ w + b), tiled over rows (M)
# -----------------------------------------------------------------------------
def _matmul_bias_act_kernel(x_ref, w_ref, b_ref, o_ref, *, apply_relu):
    acc = jnp.dot(x_ref[...], w_ref[...], preferred_element_type=jnp.float32)
    acc = acc + b_ref[...]                      # (1, N) bias broadcasts over rows
    if apply_relu:
        acc = jnp.maximum(acc, 0.0)
    o_ref[...] = acc.astype(o_ref.dtype)


def matmul_bias_act(x, w, b, *, apply_relu, out_dtype=jnp.float32, tm_max=512):
    """x: (M, K), w: (K, N), b: (N,) -> (M, N).  bf16 MXU inputs, f32 accumulation."""
    M, K = x.shape
    K2, N = w.shape
    assert K == K2, (K, K2)
    TM = _pick_tile_m(M, tm_max)
    grid_m = pl.cdiv(M, TM)

    xb = x.astype(jnp.bfloat16)
    wb = w.astype(jnp.bfloat16)
    b2 = b.reshape(1, N).astype(jnp.float32)

    out_bytes = jnp.dtype(out_dtype).itemsize
    need = 2 * TM * K * 2 + 2 * K * N * 2 + 2 * TM * N * out_bytes + 2 * N * 4
    vmem_limit = int(min(max(2 * need + (4 << 20), 32 << 20), 64 << 20))
    cost = pl.CostEstimate(
        flops=2 * M * K * N, transcendentals=0,
        bytes_accessed=M * K * 2 + K * N * 2 + M * N * out_bytes)

    return pl.pallas_call(
        functools.partial(_matmul_bias_act_kernel, apply_relu=apply_relu),
        out_shape=jax.ShapeDtypeStruct((M, N), out_dtype),
        grid=(grid_m,),
        in_specs=[
            pl.BlockSpec((TM, K), lambda i: (i, 0)),   # row tile of activations
            pl.BlockSpec((K, N), lambda i: (0, 0)),    # full weight, grid-invariant
            pl.BlockSpec((1, N), lambda i: (0, 0)),    # bias
        ],
        out_specs=pl.BlockSpec((TM, N), lambda i: (i, 0)),
        compiler_params=pltpu.CompilerParams(
            dimension_semantics=("parallel",),
            vmem_limit_bytes=vmem_limit),
        cost_estimate=cost,
    )(xb, wb, b2)


# -----------------------------------------------------------------------------
# Pallas kernel: fused fc1 (+ReLU) + fc2 head, tiled over rows (batch)
# -----------------------------------------------------------------------------
def _mlp_head_kernel(x_ref, w1_ref, b1_ref, w2_ref, b2_ref, o_ref):
    h = jnp.dot(x_ref[...], w1_ref[...], preferred_element_type=jnp.float32)
    h = jnp.maximum(h + b1_ref[...], 0.0)                           # fc1 + ReLU (f32)
    out = jnp.dot(h.astype(w2_ref.dtype), w2_ref[...],
                  preferred_element_type=jnp.float32)
    o_ref[...] = (out + b2_ref[...]).astype(o_ref.dtype)            # fc2 (no act)


def mlp_head(x, w1, b1, w2, b2, *, tm_max=256):
    """x: (M, K1), w1: (K1, H), w2: (H, NP) -> (M, NP) float32 (NP lane-dense)."""
    M, K1 = x.shape
    K1b, H = w1.shape
    Hb, NP = w2.shape
    assert K1 == K1b and H == Hb
    TM = _pick_tile_m(M, tm_max)
    grid_m = pl.cdiv(M, TM)

    need = (2 * TM * K1 * 2 + 2 * K1 * H * 2 + 2 * H * NP * 2
            + TM * H * 4 + 2 * TM * NP * 4 + 2 * (H + NP) * 4)
    vmem_limit = int(min(max(2 * need + (4 << 20), 32 << 20), 64 << 20))
    cost = pl.CostEstimate(
        flops=2 * M * (K1 * H + H * NP), transcendentals=0,
        bytes_accessed=M * K1 * 2 + K1 * H * 2 + H * NP * 2 + M * NP * 4)

    return pl.pallas_call(
        _mlp_head_kernel,
        out_shape=jax.ShapeDtypeStruct((M, NP), jnp.float32),
        grid=(grid_m,),
        in_specs=[
            pl.BlockSpec((TM, K1), lambda i: (i, 0)),
            pl.BlockSpec((K1, H), lambda i: (0, 0)),
            pl.BlockSpec((1, H), lambda i: (0, 0)),
            pl.BlockSpec((H, NP), lambda i: (0, 0)),
            pl.BlockSpec((1, NP), lambda i: (0, 0)),
        ],
        out_specs=pl.BlockSpec((TM, NP), lambda i: (i, 0)),
        compiler_params=pltpu.CompilerParams(
            dimension_semantics=("parallel",),
            vmem_limit_bytes=vmem_limit),
        cost_estimate=cost,
    )(x.astype(jnp.bfloat16), w1.astype(jnp.bfloat16),
      b1.reshape(1, H).astype(jnp.float32),
      w2.astype(jnp.bfloat16), b2.reshape(1, NP).astype(jnp.float32))


# -----------------------------------------------------------------------------
# Conv2d (valid padding, stride s) = NHWC im2col + fused Pallas matmul
# -----------------------------------------------------------------------------
def _im2col_nhwc(x, k, s):
    B, H, W, C = x.shape
    OH = (H - k) // s + 1
    OW = (W - k) // s + 1
    cols = []
    for i in range(k):
        for j in range(k):
            cols.append(x[:, i:i + (OH - 1) * s + 1:s, j:j + (OW - 1) * s + 1:s, :])
    patches = jnp.concatenate(cols, axis=-1)       # (B, OH, OW, k*k*C) in (kh, kw, c) order
    return patches.reshape(B * OH * OW, k * k * C), OH, OW


def conv2d_relu_nhwc(x, wmat, b, *, k, s):
    """x: (B,H,W,C) NHWC; wmat: (k*k*C, O) rows in (kh,kw,c) order; b: (O,)."""
    B = x.shape[0]
    patches, OH, OW = _im2col_nhwc(x, k, s)
    out = matmul_bias_act(patches, wmat, b, apply_relu=True, out_dtype=jnp.bfloat16)
    return out.reshape(B, OH, OW, wmat.shape[1])   # stays NHWC


# -----------------------------------------------------------------------------
# Model: parameters (PyTorch layout), one-time re-layout, forward
# -----------------------------------------------------------------------------
def _conv_size_out(size, kernel_size, stride):
    return (size - (kernel_size - 1) - 1) // stride + 1


def init_params(key, env_inputs, n_actions):
    """Parameters in PyTorch layout: Conv2d (O,C,k,k); Linear (out_features, in_features)."""
    C, H, W = env_inputs
    oh = _conv_size_out(_conv_size_out(_conv_size_out(H, 8, 4), 4, 2), 3, 1)
    ow = _conv_size_out(_conv_size_out(_conv_size_out(W, 8, 4), 4, 2), 3, 1)
    linear_input_size = oh * ow * 64

    ks = jax.random.split(key, 10)
    scale = 0.05
    return {
        "conv1_w": jax.random.normal(ks[0], (32, C, 8, 8), jnp.float32) * scale,
        "conv1_b": jax.random.normal(ks[1], (32,), jnp.float32) * scale,
        "conv2_w": jax.random.normal(ks[2], (64, 32, 4, 4), jnp.float32) * scale,
        "conv2_b": jax.random.normal(ks[3], (64,), jnp.float32) * scale,
        "conv3_w": jax.random.normal(ks[4], (64, 64, 3, 3), jnp.float32) * scale,
        "conv3_b": jax.random.normal(ks[5], (64,), jnp.float32) * scale,
        "fc1_w": jax.random.normal(ks[6], (512, linear_input_size), jnp.float32) * scale,
        "fc1_b": jax.random.normal(ks[7], (512,), jnp.float32) * scale,
        "fc2_w": jax.random.normal(ks[8], (n_actions, 512), jnp.float32) * scale,
        "fc2_b": jax.random.normal(ks[9], (n_actions,), jnp.float32) * scale,
    }


def _prep_conv_w(w):
    # (O, C, kh, kw) torch layout -> (kh*kw*C, O) matching the NHWC im2col row order.
    O, C, k, _ = w.shape
    return jnp.transpose(w, (2, 3, 1, 0)).reshape(k * k * C, O).astype(jnp.bfloat16)


def prepare_params(params, env_inputs, n_actions):
    """One-time weight re-layout (at init, never in the forward path)."""
    _, H, W = env_inputs
    oh = _conv_size_out(_conv_size_out(_conv_size_out(H, 8, 4), 4, 2), 3, 1)
    ow = _conv_size_out(_conv_size_out(_conv_size_out(W, 8, 4), 4, 2), 3, 1)

    # fc1 columns are laid out for torch's NCHW flatten (c, h, w); permute once so they
    # accept our NHWC flatten (h, w, c).  Semantics of the torch forward are unchanged.
    fc1_w = params["fc1_w"].reshape(512, 64, oh, ow)
    fc1_w = jnp.transpose(fc1_w, (0, 2, 3, 1)).reshape(512, oh * ow * 64)

    # fc2: store as (512, NP) with NP = n_actions zero-padded to a lane-dense 128.
    n_pad = _round_up(n_actions, 128)
    fc2_w = jnp.zeros((512, n_pad), jnp.float32).at[:, :n_actions].set(params["fc2_w"].T)
    fc2_b = jnp.zeros((n_pad,), jnp.float32).at[:n_actions].set(params["fc2_b"])

    return {
        "conv1_w": _prep_conv_w(params["conv1_w"]), "conv1_b": params["conv1_b"],
        "conv2_w": _prep_conv_w(params["conv2_w"]), "conv2_b": params["conv2_b"],
        "conv3_w": _prep_conv_w(params["conv3_w"]), "conv3_b": params["conv3_b"],
        "fc1_w": jnp.transpose(fc1_w).astype(jnp.bfloat16), "fc1_b": params["fc1_b"],
        "fc2_w": fc2_w.astype(jnp.bfloat16), "fc2_b": fc2_b,
    }


def dqn_forward(prepared, x, *, n_actions):
    # x: (B, C, H, W) NCHW float32 (PyTorch convention).
    x = jnp.transpose(x, (0, 2, 3, 1)).astype(jnp.bfloat16)       # NHWC once at entry
    x = conv2d_relu_nhwc(x, prepared["conv1_w"], prepared["conv1_b"], k=8, s=4)
    x = conv2d_relu_nhwc(x, prepared["conv2_w"], prepared["conv2_b"], k=4, s=2)
    x = conv2d_relu_nhwc(x, prepared["conv3_w"], prepared["conv3_b"], k=3, s=1)
    B = x.shape[0]
    x = x.reshape(B, -1)   # NHWC flatten; fc1_w was pre-permuted to match torch's view
    out = mlp_head(x, prepared["fc1_w"], prepared["fc1_b"],
                   prepared["fc2_w"], prepared["fc2_b"])          # fused fc1+fc2
    return out[:, :n_actions]                                     # drop lane padding


if __name__ == "__main__":
    # Small shapes consistent with the conv stack (spatial >= 36 needed):
    # batch=2, channels=4, spatial=44 -> conv outputs 10 -> 4 -> 2, linear_in = 2*2*64.
    env_inputs = (4, 44, 44)
    n_actions = 6
    batch = 2

    key = jax.random.PRNGKey(0)
    pkey, xkey = jax.random.split(key)
    params = init_params(pkey, env_inputs, n_actions)
    prepared = prepare_params(params, env_inputs, n_actions)      # one-time re-layout
    x = jax.random.normal(xkey, (batch,) + env_inputs, jnp.float32)

    fwd = jax.jit(functools.partial(dqn_forward, n_actions=n_actions))
    out = jax.block_until_ready(fwd(prepared, x))

    assert out.shape == (batch, n_actions), out.shape
    assert out.dtype == jnp.float32
    assert bool(jnp.all(jnp.isfinite(out)))
    print("KERNEL_OK")
</pallas_src>

<mosaic_0001>
module attributes {stable_mosaic.version = 11 : i64} {
  func.func @_matmul_bias_act_kernel(%arg0: i32, %arg1: memref<200x256xbf16, #tpu.memory_space<vmem>>, %arg2: memref<256x32xbf16, #tpu.memory_space<vmem>>, %arg3: memref<1x32xf32, #tpu.memory_space<vmem>>, %arg4: memref<200x32xbf16, #tpu.memory_space<vmem>>) attributes {dimension_semantics = [#tpu.dimension_semantics<parallel>], iteration_bounds = array<i64: 1>, scalar_prefetch = 0 : i64, scratch_operands = 0 : i64, tpu.core_type = #tpu.core_type<tc>, window_params = [{transform_indices = @transform_0, window_bounds = array<i64: 200, 256>}, {pipeline_mode = #tpu.pipeline_mode<synchronous>, transform_indices = @transform_1, window_bounds = array<i64: 256, 32>}, {pipeline_mode = #tpu.pipeline_mode<synchronous>, transform_indices = @transform_2, window_bounds = array<i64: 1, 32>}, {transform_indices = @transform_3, window_bounds = array<i64: 200, 32>}]} {
    %c0 = arith.constant 0 : index
    %c0_0 = arith.constant 0 : index
    %0 = vector.load %arg1[%c0, %c0_0] : memref<200x256xbf16, #tpu.memory_space<vmem>>, vector<200x256xbf16>
    %c0_1 = arith.constant 0 : index
    %c0_2 = arith.constant 0 : index
    %1 = vector.load %arg2[%c0_1, %c0_2] : memref<256x32xbf16, #tpu.memory_space<vmem>>, vector<256x32xbf16>
    %cst = arith.constant dense<0.000000e+00> : vector<200x32xf32>
    %2 = tpu.matmul %0, %1, %cst {dimension_numbers = #tpu.dot_dimension_numbers<[1], [0], [0], [1], [0, 0, 1, 1], [], []>} : vector<200x256xbf16>, vector<256x32xbf16>, vector<200x32xf32> -> vector<200x32xf32>
    %c0_3 = arith.constant 0 : index
    %c0_4 = arith.constant 0 : index
    %3 = vector.load %arg3[%c0_3, %c0_4] : memref<1x32xf32, #tpu.memory_space<vmem>>, vector<1x32xf32>
    %4 = vector.broadcast %3 : vector<1x32xf32> to vector<200x32xf32>
    %5 = arith.addf %2, %4 : vector<200x32xf32>
    %cst_5 = arith.constant 0.000000e+00 : f32
    %6 = vector.broadcast %cst_5 : f32 to vector<200x32xf32>
    %7 = arith.maximumf %5, %6 : vector<200x32xf32>
    %8 = arith.truncf %7 : vector<200x32xf32> to vector<200x32xbf16>
    %c0_6 = arith.constant 0 : index
    %c0_7 = arith.constant 0 : index
    %9 = vector.load %arg4[%c0_6, %c0_7] : memref<200x32xbf16, #tpu.memory_space<vmem>>, vector<200x32xbf16>
    tpu.vector_store %arg4[%c0_6, %c0_7], %8 {strides = array<i32>} : memref<200x32xbf16, #tpu.memory_space<vmem>>, vector<200x32xbf16>,
    return
  }
  func.func @transform_0(%arg0: i32) -> (i32, i32) {
    %c0_i32 = arith.constant 0 : i32
    %c0_i32_0 = arith.constant 0 : i32
    return %arg0, %c0_i32 : i32, i32
  }
  func.func @transform_1(%arg0: i32) -> (i32, i32) {
    %c0_i32 = arith.constant 0 : i32
    %c0_i32_0 = arith.constant 0 : i32
    %c0_i32_1 = arith.constant 0 : i32
    return %c0_i32, %c0_i32_0 : i32, i32
  }
  func.func @transform_2(%arg0: i32) -> (i32, i32) {
    %c0_i32 = arith.constant 0 : i32
    %c0_i32_0 = arith.constant 0 : i32
    %c0_i32_1 = arith.constant 0 : i32
    return %c0_i32, %c0_i32_0 : i32, i32
  }
  func.func @transform_3(%arg0: i32) -> (i32, i32) {
    %c0_i32 = arith.constant 0 : i32
    %c0_i32_0 = arith.constant 0 : i32
    return %arg0, %c0_i32 : i32, i32
  }
}

module attributes {stable_mosaic.version = 11 : i64} {
  func.func @_matmul_bias_act_kernel(%arg0: i32, %arg1: memref<32x512xbf16, #tpu.memory_space<vmem>>, %arg2: memref<512x64xbf16, #tpu.memory_space<vmem>>, %arg3: memref<1x64xf32, #tpu.memory_space<vmem>>, %arg4: memref<32x64xbf16, #tpu.memory_space<vmem>>) attributes {dimension_semantics = [#tpu.dimension_semantics<parallel>], iteration_bounds = array<i64: 1>, scalar_prefetch = 0 : i64, scratch_operands = 0 : i64, tpu.core_type = #tpu.core_type<tc>, window_params = [{transform_indices = @transform_0, window_bounds = array<i64: 32, 512>}, {pipeline_mode = #tpu.pipeline_mode<synchronous>, transform_indices = @transform_1, window_bounds = array<i64: 512, 64>}, {pipeline_mode = #tpu.pipeline_mode<synchronous>, transform_indices = @transform_2, window_bounds = array<i64: 1, 64>}, {transform_indices = @transform_3, window_bounds = array<i64: 32, 64>}]} {
    %c0 = arith.constant 0 : index
    %c0_0 = arith.constant 0 : index
    %0 = vector.load %arg1[%c0, %c0_0] : memref<32x512xbf16, #tpu.memory_space<vmem>>, vector<32x512xbf16>
    %c0_1 = arith.constant 0 : index
    %c0_2 = arith.constant 0 : index
    %1 = vector.load %arg2[%c0_1, %c0_2] : memref<512x64xbf16, #tpu.memory_space<vmem>>, vector<512x64xbf16>
    %cst = arith.constant dense<0.000000e+00> : vector<32x64xf32>
    %2 = tpu.matmul %0, %1, %cst {dimension_numbers = #tpu.dot_dimension_numbers<[1], [0], [0], [1], [0, 0, 1, 1], [], []>} : vector<32x512xbf16>, vector<512x64xbf16>, vector<32x64xf32> -> vector<32x64xf32>
    %c0_3 = arith.constant 0 : index
    %c0_4 = arith.constant 0 : index
    %3 = vector.load %arg3[%c0_3, %c0_4] : memref<1x64xf32, #tpu.memory_space<vmem>>, vector<1x64xf32>
    %4 = vector.broadcast %3 : vector<1x64xf32> to vector<32x64xf32>
    %5 = arith.addf %2, %4 : vector<32x64xf32>
    %cst_5 = arith.constant 0.000000e+00 : f32
    %6 = vector.broadcast %cst_5 : f32 to vector<32x64xf32>
    %7 = arith.maximumf %5, %6 : vector<32x64xf32>
    %8 = arith.truncf %7 : vector<32x64xf32> to vector<32x64xbf16>
    %c0_6 = arith.constant 0 : index
    %c0_7 = arith.constant 0 : index
    %9 = vector.load %arg4[%c0_6, %c0_7] : memref<32x64xbf16, #tpu.memory_space<vmem>>, vector<32x64xbf16>
    tpu.vector_store %arg4[%c0_6, %c0_7], %8 {strides = array<i32>} : memref<32x64xbf16, #tpu.memory_space<vmem>>, vector<32x64xbf16>,
    return
  }
  func.func @transform_0(%arg0: i32) -> (i32, i32) {
    %c0_i32 = arith.constant 0 : i32
    %c0_i32_0 = arith.constant 0 : i32
    return %arg0, %c0_i32 : i32, i32
  }
  func.func @transform_1(%arg0: i32) -> (i32, i32) {
    %c0_i32 = arith.constant 0 : i32
    %c0_i32_0 = arith.constant 0 : i32
    %c0_i32_1 = arith.constant 0 : i32
    return %c0_i32, %c0_i32_0 : i32, i32
  }
  func.func @transform_2(%arg0: i32) -> (i32, i32) {
    %c0_i32 = arith.constant 0 : i32
    %c0_i32_0 = arith.constant 0 : i32
    %c0_i32_1 = arith.constant 0 : i32
    return %c0_i32, %c0_i32_0 : i32, i32
  }
  func.func @transform_3(%arg0: i32) -> (i32, i32) {
    %c0_i32 = arith.constant 0 : i32
    %c0_i32_0 = arith.constant 0 : i32
    return %arg0, %c0_i32 : i32, i32
  }
}

module attributes {stable_mosaic.version = 11 : i64} {
  func.func @_matmul_bias_act_kernel(%arg0: i32, %arg1: memref<8x576xbf16, #tpu.memory_space<vmem>>, %arg2: memref<576x64xbf16, #tpu.memory_space<vmem>>, %arg3: memref<1x64xf32, #tpu.memory_space<vmem>>, %arg4: memref<8x64xbf16, #tpu.memory_space<vmem>>) attributes {dimension_semantics = [#tpu.dimension_semantics<parallel>], iteration_bounds = array<i64: 1>, scalar_prefetch = 0 : i64, scratch_operands = 0 : i64, tpu.core_type = #tpu.core_type<tc>, window_params = [{transform_indices = @transform_0, window_bounds = array<i64: 8, 576>}, {pipeline_mode = #tpu.pipeline_mode<synchronous>, transform_indices = @transform_1, window_bounds = array<i64: 576, 64>}, {pipeline_mode = #tpu.pipeline_mode<synchronous>, transform_indices = @transform_2, window_bounds = array<i64: 1, 64>}, {transform_indices = @transform_3, window_bounds = array<i64: 8, 64>}]} {
    %c0 = arith.constant 0 : index
    %c0_0 = arith.constant 0 : index
    %0 = vector.load %arg1[%c0, %c0_0] : memref<8x576xbf16, #tpu.memory_space<vmem>>, vector<8x576xbf16>
    %c0_1 = arith.constant 0 : index
    %c0_2 = arith.constant 0 : index
    %1 = vector.load %arg2[%c0_1, %c0_2] : memref<576x64xbf16, #tpu.memory_space<vmem>>, vector<576x64xbf16>
    %cst = arith.constant dense<0.000000e+00> : vector<8x64xf32>
    %2 = tpu.matmul %0, %1, %cst {dimension_numbers = #tpu.dot_dimension_numbers<[1], [0], [0], [1], [0, 0, 1, 1], [], []>} : vector<8x576xbf16>, vector<576x64xbf16>, vector<8x64xf32> -> vector<8x64xf32>
    %c0_3 = arith.constant 0 : index
    %c0_4 = arith.constant 0 : index
    %3 = vector.load %arg3[%c0_3, %c0_4] : memref<1x64xf32, #tpu.memory_space<vmem>>, vector<1x64xf32>
    %4 = vector.broadcast %3 : vector<1x64xf32> to vector<8x64xf32>
    %5 = arith.addf %2, %4 : vector<8x64xf32>
    %cst_5 = arith.constant 0.000000e+00 : f32
    %6 = vector.broadcast %cst_5 : f32 to vector<8x64xf32>
    %7 = arith.maximumf %5, %6 : vector<8x64xf32>
    %8 = arith.truncf %7 : vector<8x64xf32> to vector<8x64xbf16>
    %c0_6 = arith.constant 0 : index
    %c0_7 = arith.constant 0 : index
    %9 = vector.load %arg4[%c0_6, %c0_7] : memref<8x64xbf16, #tpu.memory_space<vmem>>, vector<8x64xbf16>
    tpu.vector_store %arg4[%c0_6, %c0_7], %8 {strides = array<i32>} : memref<8x64xbf16, #tpu.memory_space<vmem>>, vector<8x64xbf16>,
    return
  }
  func.func @transform_0(%arg0: i32) -> (i32, i32) {
    %c0_i32 = arith.constant 0 : i32
    %c0_i32_0 = arith.constant 0 : i32
    return %arg0, %c0_i32 : i32, i32
  }
  func.func @transform_1(%arg0: i32) -> (i32, i32) {
    %c0_i32 = arith.constant 0 : i32
    %c0_i32_0 = arith.constant 0 : i32
    %c0_i32_1 = arith.constant 0 : i32
    return %c0_i32, %c0_i32_0 : i32, i32
  }
  func.func @transform_2(%arg0: i32) -> (i32, i32) {
    %c0_i32 = arith.constant 0 : i32
    %c0_i32_0 = arith.constant 0 : i32
    %c0_i32_1 = arith.constant 0 : i32
    return %c0_i32, %c0_i32_0 : i32, i32
  }
  func.func @transform_3(%arg0: i32) -> (i32, i32) {
    %c0_i32 = arith.constant 0 : i32
    %c0_i32_0 = arith.constant 0 : i32
    return %arg0, %c0_i32 : i32, i32
  }
}

module attributes {stable_mosaic.version = 11 : i64} {
  func.func @_mlp_head_kernel(%arg0: i32, %arg1: memref<2x256xbf16, #tpu.memory_space<vmem>>, %arg2: memref<256x512xbf16, #tpu.memory_space<vmem>>, %arg3: memref<1x512xf32, #tpu.memory_space<vmem>>, %arg4: memref<512x128xbf16, #tpu.memory_space<vmem>>, %arg5: memref<1x128xf32, #tpu.memory_space<vmem>>, %arg6: memref<2x128xf32, #tpu.memory_space<vmem>>) attributes {dimension_semantics = [#tpu.dimension_semantics<parallel>], iteration_bounds = array<i64: 1>, scalar_prefetch = 0 : i64, scratch_operands = 0 : i64, tpu.core_type = #tpu.core_type<tc>, window_params = [{transform_indices = @transform_0, window_bounds = array<i64: 2, 256>}, {pipeline_mode = #tpu.pipeline_mode<synchronous>, transform_indices = @transform_1, window_bounds = array<i64: 256, 512>}, {pipeline_mode = #tpu.pipeline_mode<synchronous>, transform_indices = @transform_2, window_bounds = array<i64: 1, 512>}, {pipeline_mode = #tpu.pipeline_mode<synchronous>, transform_indices = @transform_3, window_bounds = array<i64: 512, 128>}, {pipeline_mode = #tpu.pipeline_mode<synchronous>, transform_indices = @transform_4, window_bounds = array<i64: 1, 128>}, {transform_indices = @transform_5, window_bounds = array<i64: 2, 128>}]} {
    %c0 = arith.constant 0 : index
    %c0_0 = arith.constant 0 : index
    %0 = vector.load %arg1[%c0, %c0_0] : memref<2x256xbf16, #tpu.memory_space<vmem>>, vector<2x256xbf16>
    %c0_1 = arith.constant 0 : index
    %c0_2 = arith.constant 0 : index
    %1 = vector.load %arg2[%c0_1, %c0_2] : memref<256x512xbf16, #tpu.memory_space<vmem>>, vector<256x512xbf16>
    %cst = arith.constant dense<0.000000e+00> : vector<2x512xf32>
    %2 = tpu.matmul %0, %1, %cst {dimension_numbers = #tpu.dot_dimension_numbers<[1], [0], [0], [1], [0, 0, 1, 1], [], []>} : vector<2x256xbf16>, vector<256x512xbf16>, vector<2x512xf32> -> vector<2x512xf32>
    %c0_3 = arith.constant 0 : index
    %c0_4 = arith.constant 0 : index
    %3 = vector.load %arg3[%c0_3, %c0_4] : memref<1x512xf32, #tpu.memory_space<vmem>>, vector<1x512xf32>
    %4 = vector.broadcast %3 : vector<1x512xf32> to vector<2x512xf32>
    %5 = arith.addf %2, %4 : vector<2x512xf32>
    %cst_5 = arith.constant 0.000000e+00 : f32
    %6 = vector.broadcast %cst_5 : f32 to vector<2x512xf32>
    %7 = arith.maximumf %5, %6 : vector<2x512xf32>
    %8 = arith.truncf %7 : vector<2x512xf32> to vector<2x512xbf16>
    %c0_6 = arith.constant 0 : index
    %c0_7 = arith.constant 0 : index
    %9 = vector.load %arg4[%c0_6, %c0_7] : memref<512x128xbf16, #tpu.memory_space<vmem>>, vector<512x128xbf16>
    %cst_8 = arith.constant dense<0.000000e+00> : vector<2x128xf32>
    %10 = tpu.matmul %8, %9, %cst_8 {dimension_numbers = #tpu.dot_dimension_numbers<[1], [0], [0], [1], [0, 0, 1, 1], [], []>} : vector<2x512xbf16>, vector<512x128xbf16>, vector<2x128xf32> -> vector<2x128xf32>
    %c0_9 = arith.constant 0 : index
    %c0_10 = arith.constant 0 : index
    %11 = vector.load %arg5[%c0_9, %c0_10] : memref<1x128xf32, #tpu.memory_space<vmem>>, vector<1x128xf32>
    %12 = vector.broadcast %11 : vector<1x128xf32> to vector<2x128xf32>
    %13 = arith.addf %10, %12 : vector<2x128xf32>
    %c0_11 = arith.constant 0 : index
    %c0_12 = arith.constant 0 : index
    %14 = vector.load %arg6[%c0_11, %c0_12] : memref<2x128xf32, #tpu.memory_space<vmem>>, vector<2x128xf32>
    tpu.vector_store %arg6[%c0_11, %c0_12], %13 {strides = array<i32>} : memref<2x128xf32, #tpu.memory_space<vmem>>, vector<2x128xf32>,
    return
  }
  func.func @transform_0(%arg0: i32) -> (i32, i32) {
    %c0_i32 = arith.constant 0 : i32
    %c0_i32_0 = arith.constant 0 : i32
    return %arg0, %c0_i32 : i32, i32
  }
  func.func @transform_1(%arg0: i32) -> (i32, i32) {
    %c0_i32 = arith.constant 0 : i32
    %c0_i32_0 = arith.constant 0 : i32
    %c0_i32_1 = arith.constant 0 : i32
    return %c0_i32, %c0_i32_0 : i32, i32
  }
  func.func @transform_2(%arg0: i32) -> (i32, i32) {
    %c0_i32 = arith.constant 0 : i32
    %c0_i32_0 = arith.constant 0 : i32
    %c0_i32_1 = arith.constant 0 : i32
    return %c0_i32, %c0_i32_0 : i32, i32
  }
  func.func @transform_3(%arg0: i32) -> (i32, i32) {
    %c0_i32 = arith.constant 0 : i32
    %c0_i32_0 = arith.constant 0 : i32
    %c0_i32_1 = arith.constant 0 : i32
    return %c0_i32, %c0_i32_0 : i32, i32
  }
  func.func @transform_4(%arg0: i32) -> (i32, i32) {
    %c0_i32 = arith.constant 0 : i32
    %c0_i32_0 = arith.constant 0 : i32
    %c0_i32_1 = arith.constant 0 : i32
    return %c0_i32, %c0_i32_0 : i32, i32
  }
  func.func @transform_5(%arg0: i32) -> (i32, i32) {
    %c0_i32 = arith.constant 0 : i32
    %c0_i32_0 = arith.constant 0 : i32
    return %arg0, %c0_i32 : i32, i32
  }
}

</mosaic_0001>

<bundles_post_ra>
// kernel: dqn_forward.4
= control target key start
LH: loop header
LB: loop body
LE: loop exit
PB: predicated region body
PF: predicated region fallthrough
CT: control target
= control target key end

     0   :  { %vm564_vm0 = vcmask 257024   ;;  %s1124_s1 = inlined_call_operand.vmem [shape: bf16[256,32], index: 1, kind: input, shape index: {}]   ;;  %s1125_s0 = inlined_call_operand.vmem [shape: bf16[200,256], index: 0, kind: input, shape index: {}]   ;;  %s1126_s2 = inlined_call_operand.vmem [shape: f32[1,32], index: 2, kind: input, shape index: {}]   ;;  %s1127_s3 = inlined_call_operand.vmem [shape: bf16[200,32], index: 3, kind: output, shape index: {}]  }
   0x1   :  { %v797_v0 = vld [vmem:[%s1124_s1 + $0x40] sm:$0xff]   ;;  %v799_v2 = vld [vmem:[%s1124_s1 + $0x48] sm:$0xff]   ;;  %v801_v4 = vld [vmem:[%s1124_s1 + $0x50] sm:$0xff]  }
   0x2   :  { %v798_v1 = vld [vmem:[%s1124_s1] sm:$0xff]   ;;  %687 = vmatprep.subr.bf16.mxu0 %v797_v0  ;;  %781 = vmatprep.subr.bf16.mxu1 %v797_v0  ;;  %v800_v3 = vld [vmem:[%s1124_s1 + $0x8] sm:$0xff]   ;;  %v802_v5 = vld [vmem:[%s1124_s1 + $0x10] sm:$0xff]  }
   0x3   :  { %688 = vmatpush3.bf16.msra.mxu0 %v798_v1  ;;  %789 = vmatpush3.bf16.msra.mxu1 %v798_v1  ;;  %v803_v6 = vld [vmem:[%s1124_s1 + $0x58] sm:$0xff]   ;;  %v805_v8 = vld [vmem:[%s1124_s1 + $0x60] sm:$0xff]   ;;  %v807_v10 = vld [vmem:[%s1124_s1 + $0x68] sm:$0xff]  }
   0x4   :  { %689 = vmatprep.subr.bf16.mxu0 %v799_v2  ;;  %782 = vmatprep.subr.bf16.mxu1 %v799_v2  ;;  %v804_v7 = vld [vmem:[%s1124_s1 + $0x18] sm:$0xff]   ;;  %v806_v9 = vld [vmem:[%s1124_s1 + $0x20] sm:$0xff]   ;;  %v808_v13 = vld [vmem:[%s1124_s1 + $0x28] sm:$0xff]  }
   0x5   :  { %v815_v11 = vld [vmem:[%s1125_s0 + $0x4] ss:$8 sps:$4 sm:$0xff]   ;;  %v818_v12 = vld [vmem:[%s1125_s0 + $0x74] ss:$8 sps:$4 sm:$0xff]   ;;  %v813_v18 = vld [vmem:[%s1125_s0] ss:$8 sps:$4 sm:$0xff]  }
   0x6   :  { %v809_v14 = vld [vmem:[%s1124_s1 + $0x70] sm:$0xff]   ;;  %334 = vmatprep.mubr.bf16.mxu0 %v815_v11  ;;  %390 = vmatprep.mubr.bf16.mxu1 %v818_v12  ;;  %v811_v16 = vld [vmem:[%s1124_s1 + $0x78] sm:$0xff]   ;;  %v822_v21 = vld [vmem:[%s1125_s0 + $0x84] ss:$8 sps:$4 sm:$0xff]  }
   0x7   :  { %690 = vmatpush3.bf16.msra.mxu0 %v800_v3  ;;  %790 = vmatpush3.bf16.msra.mxu1 %v800_v3  ;;  %v810_v15 = vld [vmem:[%s1124_s1 + $0x30] sm:$0xff]   ;;  %v812_v17 = vld [vmem:[%s1124_s1 + $0x38] sm:$0xff]   ;;  %v826_v23 = vld [vmem:[%s1125_s0 + $0x80] ss:$8 sps:$4 sm:$0xff]  }
   0x8   :  { %691 = vmatprep.subr.bf16.mxu0 %v801_v4  ;;  %783 = vmatprep.subr.bf16.mxu1 %v801_v4  ;;  %v816_v19 = vld [vmem:[%s1125_s0 + $0x70] ss:$8 sps:$4 sm:$0xff]   ;;  %v819_v20 = vld [vmem:[%s1125_s0 + $0x14] ss:$8 sps:$4 sm:$0xff]   ;;  %v824_v24 = vld [vmem:[%s1125_s0 + $0x24] ss:$8 sps:$4 sm:$0xff]  }
   0x9   :  { %v821_v22 = vld [vmem:[%s1125_s0 + $0x10] ss:$8 sps:$4 sm:$0xff]   ;;  %v828_v25 = vld [vmem:[%s1125_s0 + $0x94] ss:$8 sps:$4 sm:$0xff]   ;;  %v827_v26 = vld [vmem:[%s1125_s0 + $0x20] ss:$8 sps:$4 sm:$0xff]  }
   0xa   :  { %v832_v27 = vld [vmem:[%s1125_s0 + $0x90] ss:$8 sps:$4 sm:$0xff]   ;;  %v830_v28 = vld [vmem:[%s1125_s0 + $0x34] ss:$8 sps:$4 sm:$0xff]   ;;  %v834_v29 = vld [vmem:[%s1125_s0 + $0xa4] ss:$8 sps:$4 sm:$0xff]  }
   0xb   :  { %692 = vmatpush3.bf16.msra.mxu0 %v802_v5  ;;  %791 = vmatpush3.bf16.msra.mxu1 %v802_v5  ;;  %v833_v30 = vld [vmem:[%s1125_s0 + $0x30] ss:$8 sps:$4 sm:$0xff]   ;;  %v838_v31 = vld [vmem:[%s1125_s0 + $0xa0] ss:$8 sps:$4 sm:$0xff]   ;;  %v836_v32 = vld [vmem:[%s1125_s0 + $0x44] ss:$8 sps:$4 sm:$0xff]  }
   0xc   :  { %693 = vmatprep.subr.bf16.mxu0 %v803_v6  ;;  %784 = vmatprep.subr.bf16.mxu1 %v803_v6  ;;  %v840_v33 = vld [vmem:[%s1125_s0 + $0xb4] ss:$8 sps:$4 sm:$0xff]   ;;  %v39_v34 = vld [vmem:[%s1125_s0 + $0xc0] sm:$0xff]  ;;  %v844_v36 = vld [vmem:[%s1125_s0 + $0xb0] ss:$8 sps:$4 sm:$0xff]  }
   0xd   :  { %v839_v35 = vld [vmem:[%s1125_s0 + $0x40] ss:$8 sps:$4 sm:$0xff]   ;;  %v842_v37 = vld [vmem:[%s1125_s0 + $0x54] ss:$8 sps:$4 sm:$0xff]   ;;  %v620_v38 = vcombine.high %v39_v34, %v39_v34  ;;  %v845_v39 = vld [vmem:[%s1125_s0 + $0x50] ss:$8 sps:$4 sm:$0xff]   ;;  %v619_v40 = vcombine.low %v39_v34, %v39_v34 }
   0xe   :  { %v847_v41 = vld [vmem:[%s1125_s0 + $0x64] ss:$8 sps:$4 sm:$0xff]   ;;  %v850_v42 = vld [vmem:[%s1125_s0 + $0x60] ss:$8 sps:$4 sm:$0xff]  }
   0xf   :  { %694 = vmatpush3.bf16.msra.mxu0 %v804_v7  ;;  %792 = vmatpush3.bf16.msra.mxu1 %v804_v7  ;;  %v997_v45 = vld [vmem:[%s1126_s2] ss:$0 sm:$0xff] }
  0x10   :  { %695 = vmatprep.subr.bf16.mxu0 %v805_v8  ;;  %785 = vmatprep.subr.bf16.mxu1 %v805_v8 }
  0x13   :  { %696 = vmatpush3.bf16.msra.mxu0 %v806_v9  ;;  %793 = vmatpush3.bf16.msra.mxu1 %v806_v9 }
  0x14   :  { %697 = vmatprep.subr.bf16.mxu0 %v807_v10  ;;  %786 = vmatprep.subr.bf16.mxu1 %v807_v10 }
  0x17   :  { %698 = vmatpush3.bf16.msra.mxu0 %v808_v13  ;;  %794 = vmatpush3.bf16.msra.mxu1 %v808_v13 }
  0x18   :  { %699 = vmatprep.subr.bf16.mxu0 %v809_v14  ;;  %787 = vmatprep.subr.bf16.mxu1 %v809_v14 }
  0x1b   :  { %700 = vmatpush3.bf16.msra.mxu0 %v810_v15  ;;  %795 = vmatpush3.bf16.msra.mxu1 %v810_v15 }
  0x1c   :  { %701 = vmatprep.subr.bf16.mxu0 %v811_v16  ;;  %788 = vmatprep.subr.bf16.mxu1 %v811_v16 }
  0x1f   :  { %702 = vmatpush3.bf16.msra.mxu0 %v812_v17  ;;  %796 = vmatpush3.bf16.msra.mxu1 %v812_v17 }
  0x22   :  { %335 = vmatmul.mubr.bf16.vlgmr.msra.gmra.mrb[0].mxu0 %v813_v18  ;;  %391 = vmatmul.mubr.bf16.vlgmr.msra.gmra.mrb[0].mxu1 %v816_v19 }
  0x23   :  { %342 = vmatprep.mubr.bf16.mxu0 %v819_v20  ;;  %398 = vmatprep.mubr.bf16.mxu1 %v822_v21 }
  0x2a   :  { %343 = vmatmul.mubr.bf16.gmra.mrb[4].mxu0 %v821_v22  ;;  %399 = vmatmul.mubr.bf16.gmra.mrb[4].mxu1 %v826_v23 }
  0x2b   :  { %350 = vmatprep.mubr.bf16.mxu0 %v824_v24  ;;  %406 = vmatprep.mubr.bf16.mxu1 %v828_v25 }
  0x32   :  { %351 = vmatmul.mubr.bf16.gmra.mrb[8].mxu0 %v827_v26  ;;  %407 = vmatmul.mubr.bf16.gmra.mrb[8].mxu1 %v832_v27 }
  0x33   :  { %358 = vmatprep.mubr.bf16.mxu0 %v830_v28  ;;  %414 = vmatprep.mubr.bf16.mxu1 %v834_v29 }
  0x3a   :  { %359 = vmatmul.mubr.bf16.gmra.mrb[12].mxu0 %v833_v30  ;;  %415 = vmatmul.mubr.bf16.gmra.mrb[12].mxu1 %v838_v31 }
  0x3b   :  { %366 = vmatprep.mubr.bf16.mxu0 %v836_v32  ;;  %422 = vmatprep.mubr.bf16.mxu1 %v840_v33 }
  0x42   :  { %367 = vmatmul.mubr.bf16.gmra.mrb[16].mxu0 %v839_v35  ;;  %423 = vmatmul.mubr.bf16.gmra.mrb[16].mxu1 %v844_v36 }
  0x43   :  { %374 = vmatprep.mubr.bf16.mxu0 %v842_v37  ;;  %430 = vmatprep.mubr.bf16.mxu1 %v620_v38 }
  0x4a   :  { %375 = vmatmul.mubr.bf16.gmra.mrb[20].mxu0 %v845_v39  ;;  %431 = vmatmul.mubr.bf16.gmra.mrb[20].mxu1 %v619_v40 }
  0x4b   :  { %382 = vmatprep.mubr.bf16.mxu0 %v847_v41 }
  0x52   :  { %383 = vmatmul.mubr.bf16.gmra.mrb[24].mxu0 %v850_v42 }
  0xf5   :  { %v703_v43 = vpop.f32.mrb[0].mxu0  ;;  %v745_v44 = vpop.f32.mrb[0].mxu1 }
  0xf6   :  { %v704_v46 = vpop.f32.mrb[1].mxu0  ;;  %v746_v47 = vpop.f32.mrb[1].mxu1 }
  0xf7   :  { %v705_v48 = vadd.f32 %v704_v46, %v703_v43  ;;  %v706_v49 = vpop.f32.mrb[2].mxu0  ;;  %v747_v50 = vadd.f32 %v746_v47, %v745_v44  ;;  %v748_v51 = vpop.f32.mrb[2].mxu1 }
  0xf8   :  { %v707_v52 = vpop.f32.mrb[3].mxu0  ;;  %v749_v53 = vpop.f32.mrb[3].mxu1 }
  0xf9   :  { %v337_v54 = vadd.f32 %v705_v48, %v997_v45  ;;  %v708_v55 = vadd.f32 %v707_v52, %v706_v49  ;;  %v393_v56 = vadd.f32 %v747_v50, %v997_v45  ;;  %v750_v57 = vadd.f32 %v749_v53, %v748_v51 }
  0xfb   :  { %v438_v58 = vmax.f32 %v337_v54, 0.0  ;;  %v340_v59 = vadd.f32 %v708_v55, %v997_v45  ;;  %v452_v60 = vmax.f32 %v393_v56, 0.0  ;;  %v396_v61 = vadd.f32 %v750_v57, %v997_v45 }
  0xfd   :  { %v662_v62 = vpack.c.bf16 %v438_v58, %v438_v58  ;;  %v439_v63 = vmax.f32 %v340_v59, 0.0  ;;  %v709_v0 = vpop.f32.mrb[4].mxu0  ;;  %v676_v1 = vpack.c.bf16 %v452_v60, %v452_v60  ;;  %v453_v2 = vmax.f32 %v396_v61, 0.0  ;;  %v751_v3 = vpop.f32.mrb[4].mxu1 }
  0xfe   :  { %v710_v4 = vpop.f32.mrb[5].mxu0  ;;  %v752_v5 = vpop.f32.mrb[5].mxu1 }
  0xff   :  { %565 = vst.msk [vmem:[%s1127_s3] sm:$0xf] %vm564_vm0, %v662_v62  ;;  %v663_v6 = vpack.c.bf16 %v439_v63, %v439_v63  ;;  %579 = vst.msk [vmem:[%s1127_s3 + $0x38] sm:$0xf] %vm564_vm0, %v676_v1  ;;  %v711_v7 = vadd.f32 %v710_v4, %v709_v0  ;;  %v712_v8 = vpop.f32.mrb[6].mxu0  ;;  %v677_v9 = vpack.c.bf16 %v453_v2, %v453_v2  ;;  %v754_v11 = vpop.f32.mrb[6].mxu1 }
 0x100   :  { %v753_v10 = vadd.f32 %v752_v5, %v751_v3  ;;  %v713_v12 = vpop.f32.mrb[7].mxu0  ;;  %v755_v13 = vpop.f32.mrb[7].mxu1 }
 0x101   :  { %566 = vst.msk [vmem:[%s1127_s3 + $0x4] sm:$0xf] %vm564_vm0, %v663_v6  ;;  %v345_v14 = vadd.f32 %v711_v7, %v997_v45  ;;  %580 = vst.msk [vmem:[%s1127_s3 + $0x3c] sm:$0xf] %vm564_vm0, %v677_v9  ;;  %v714_v15 = vadd.f32 %v713_v12, %v712_v8  ;;  %v756_v17 = vadd.f32 %v755_v13, %v754_v11 }
 0x102   :  { %v401_v16 = vadd.f32 %v753_v10, %v997_v45 }
 0x103   :  { %v440_v18 = vmax.f32 %v345_v14, 0.0  ;;  %v348_v19 = vadd.f32 %v714_v15, %v997_v45  ;;  %v404_v21 = vadd.f32 %v756_v17, %v997_v45 }
 0x104   :  { %v454_v20 = vmax.f32 %v401_v16, 0.0 }
 0x105   :  { %v664_v22 = vpack.c.bf16 %v440_v18, %v440_v18  ;;  %v441_v23 = vmax.f32 %v348_v19, 0.0  ;;  %v715_v24 = vpop.f32.mrb[8].mxu0  ;;  %v455_v26 = vmax.f32 %v404_v21, 0.0  ;;  %v757_v27 = vpop.f32.mrb[8].mxu1 }
 0x106   :  { %v678_v25 = vpack.c.bf16 %v454_v20, %v454_v20  ;;  %v716_v28 = vpop.f32.mrb[9].mxu0  ;;  %v758_v29 = vpop.f32.mrb[9].mxu1 }
 0x107   :  { %567 = vst.msk [vmem:[%s1127_s3 + $0x8] sm:$0xf] %vm564_vm0, %v664_v22  ;;  %v665_v30 = vpack.c.bf16 %v441_v23, %v441_v23  ;;  %v717_v31 = vadd.f32 %v716_v28, %v715_v24  ;;  %v718_v32 = vpop.f32.mrb[10].mxu0  ;;  %v679_v33 = vpack.c.bf16 %v455_v26, %v455_v26  ;;  %v759_v34 = vadd.f32 %v758_v29, %v757_v27  ;;  %v760_v35 = vpop.f32.mrb[10].mxu1 }
 0x108   :  { %581 = vst.msk [vmem:[%s1127_s3 + $0x40] sm:$0xf] %vm564_vm0, %v678_v25  ;;  %v719_v36 = vpop.f32.mrb[11].mxu0  ;;  %v761_v37 = vpop.f32.mrb[11].mxu1 }
 0x109   :  { %568 = vst.msk [vmem:[%s1127_s3 + $0xc] sm:$0xf] %vm564_vm0, %v665_v30  ;;  %v353_v38 = vadd.f32 %v717_v31, %v997_v45  ;;  %582 = vst.msk [vmem:[%s1127_s3 + $0x44] sm:$0xf] %vm564_vm0, %v679_v33  ;;  %v720_v39 = vadd.f32 %v719_v36, %v718_v32  ;;  %v409_v40 = vadd.f32 %v759_v34, %v997_v45 }
 0x10a   :  { %v762_v41 = vadd.f32 %v761_v37, %v760_v35 }
 0x10b   :  { %v442_v42 = vmax.f32 %v353_v38, 0.0  ;;  %v356_v43 = vadd.f32 %v720_v39, %v997_v45  ;;  %v456_v44 = vmax.f32 %v409_v40, 0.0 }
 0x10c   :  { %v412_v46 = vadd.f32 %v762_v41, %v997_v45 }
 0x10d   :  { %v666_v47 = vpack.c.bf16 %v442_v42, %v442_v42  ;;  %v443_v48 = vmax.f32 %v356_v43, 0.0  ;;  %v721_v49 = vpop.f32.mrb[12].mxu0  ;;  %v680_v50 = vpack.c.bf16 %v456_v44, %v456_v44  ;;  %v763_v52 = vpop.f32.mrb[12].mxu1 }
 0x10e   :  { %v457_v51 = vmax.f32 %v412_v46, 0.0  ;;  %v722_v53 = vpop.f32.mrb[13].mxu0  ;;  %v764_v54 = vpop.f32.mrb[13].mxu1 }
 0x10f   :  { %569 = vst.msk [vmem:[%s1127_s3 + $0x10] sm:$0xf] %vm564_vm0, %v666_v47  ;;  %v667_v55 = vpack.c.bf16 %v443_v48, %v443_v48  ;;  %583 = vst.msk [vmem:[%s1127_s3 + $0x48] sm:$0xf] %vm564_vm0, %v680_v50  ;;  %v723_v56 = vadd.f32 %v722_v53, %v721_v49  ;;  %v724_v57 = vpop.f32.mrb[14].mxu0  ;;  %v765_v59 = vadd.f32 %v764_v54, %v763_v52  ;;  %v766_v60 = vpop.f32.mrb[14].mxu1 }
 0x110   :  { %v681_v58 = vpack.c.bf16 %v457_v51, %v457_v51  ;;  %v725_v61 = vpop.f32.mrb[15].mxu0  ;;  %v767_v62 = vpop.f32.mrb[15].mxu1 }
 0x111   :  { %570 = vst.msk [vmem:[%s1127_s3 + $0x14] sm:$0xf] %vm564_vm0, %v667_v55  ;;  %v361_v63 = vadd.f32 %v723_v56, %v997_v45  ;;  %v726_v0 = vadd.f32 %v725_v61, %v724_v57  ;;  %v417_v1 = vadd.f32 %v765_v59, %v997_v45  ;;  %v768_v2 = vadd.f32 %v767_v62, %v766_v60 }
 0x112   :  { %584 = vst.msk [vmem:[%s1127_s3 + $0x4c] sm:$0xf] %vm564_vm0, %v681_v58 }
 0x113   :  { %v444_v3 = vmax.f32 %v361_v63, 0.0  ;;  %v364_v4 = vadd.f32 %v726_v0, %v997_v45  ;;  %v458_v5 = vmax.f32 %v417_v1, 0.0  ;;  %v420_v6 = vadd.f32 %v768_v2, %v997_v45 }
 0x115   :  { %v668_v7 = vpack.c.bf16 %v444_v3, %v444_v3  ;;  %v445_v8 = vmax.f32 %v364_v4, 0.0  ;;  %v727_v9 = vpop.f32.mrb[16].mxu0  ;;  %v682_v10 = vpack.c.bf16 %v458_v5, %v458_v5  ;;  %v459_v11 = vmax.f32 %v420_v6, 0.0  ;;  %v769_v12 = vpop.f32.mrb[16].mxu1 }
 0x116   :  { %v728_v13 = vpop.f32.mrb[17].mxu0  ;;  %v770_v14 = vpop.f32.mrb[17].mxu1 }
 0x117   :  { %571 = vst.msk [vmem:[%s1127_s3 + $0x18] sm:$0xf] %vm564_vm0, %v668_v7  ;;  %v669_v15 = vpack.c.bf16 %v445_v8, %v445_v8  ;;  %585 = vst.msk [vmem:[%s1127_s3 + $0x50] sm:$0xf] %vm564_vm0, %v682_v10  ;;  %v729_v16 = vadd.f32 %v728_v13, %v727_v9  ;;  %v730_v17 = vpop.f32.mrb[18].mxu0  ;;  %v683_v18 = vpack.c.bf16 %v459_v11, %v459_v11  ;;  %v772_v20 = vpop.f32.mrb[18].mxu1 }
 0x118   :  { %v771_v19 = vadd.f32 %v770_v14, %v769_v12  ;;  %v731_v21 = vpop.f32.mrb[19].mxu0  ;;  %v773_v22 = vpop.f32.mrb[19].mxu1 }
 0x119   :  { %572 = vst.msk [vmem:[%s1127_s3 + $0x1c] sm:$0xf] %vm564_vm0, %v669_v15  ;;  %v369_v23 = vadd.f32 %v729_v16, %v997_v45  ;;  %586 = vst.msk [vmem:[%s1127_s3 + $0x54] sm:$0xf] %vm564_vm0, %v683_v18  ;;  %v732_v24 = vadd.f32 %v731_v21, %v730_v17  ;;  %v774_v26 = vadd.f32 %v773_v22, %v772_v20 }
 0x11a   :  { %v425_v25 = vadd.f32 %v771_v19, %v997_v45 }
 0x11b   :  { %v446_v27 = vmax.f32 %v369_v23, 0.0  ;;  %v372_v28 = vadd.f32 %v732_v24, %v997_v45  ;;  %v428_v30 = vadd.f32 %v774_v26, %v997_v45 }
 0x11c   :  { %v460_v29 = vmax.f32 %v425_v25, 0.0 }
 0x11d   :  { %v670_v31 = vpack.c.bf16 %v446_v27, %v446_v27  ;;  %v447_v32 = vmax.f32 %v372_v28, 0.0  ;;  %v733_v33 = vpop.f32.mrb[20].mxu0  ;;  %v461_v35 = vmax.f32 %v428_v30, 0.0  ;;  %v775_v36 = vpop.f32.mrb[20].mxu1 }
 0x11e   :  { %v684_v34 = vpack.c.bf16 %v460_v29, %v460_v29  ;;  %v734_v37 = vpop.f32.mrb[21].mxu0  ;;  %v776_v38 = vpop.f32.mrb[21].mxu1 }
 0x11f   :  { %573 = vst.msk [vmem:[%s1127_s3 + $0x20] sm:$0xf] %vm564_vm0, %v670_v31  ;;  %v671_v39 = vpack.c.bf16 %v447_v32, %v447_v32  ;;  %v735_v40 = vadd.f32 %v734_v37, %v733_v33  ;;  %v736_v41 = vpop.f32.mrb[22].mxu0  ;;  %v685_v42 = vpack.c.bf16 %v461_v35, %v461_v35  ;;  %v777_v43 = vadd.f32 %v776_v38, %v775_v36  ;;  %v778_v44 = vpop.f32.mrb[22].mxu1 }
 0x120   :  { %587 = vst.msk [vmem:[%s1127_s3 + $0x58] sm:$0xf] %vm564_vm0, %v684_v34  ;;  %v737_v46 = vpop.f32.mrb[23].mxu0  ;;  %v779_v47 = vpop.f32.mrb[23].mxu1 }
 0x121   :  { %574 = vst.msk [vmem:[%s1127_s3 + $0x24] sm:$0xf] %vm564_vm0, %v671_v39  ;;  %v377_v48 = vadd.f32 %v735_v40, %v997_v45  ;;  %588 = vst.msk [vmem:[%s1127_s3 + $0x5c] sm:$0xf] %vm564_vm0, %v685_v42  ;;  %v738_v49 = vadd.f32 %v737_v46, %v736_v41  ;;  %v433_v50 = vadd.f32 %v777_v43, %v997_v45 }
 0x123   :  { %v448_v51 = vmax.f32 %v377_v48, 0.0  ;;  %v380_v52 = vadd.f32 %v738_v49, %v997_v45  ;;  %v462_v53 = vmax.f32 %v433_v50, 0.0 }
 0x125   :  { %v672_v54 = vpack.c.bf16 %v448_v51, %v448_v51  ;;  %v449_v55 = vmax.f32 %v380_v52, 0.0  ;;  %v739_v56 = vpop.f32.mrb[24].mxu0  ;;  %v686_v57 = vpack.c.bf16 %v462_v53, %v462_v53 }
 0x126   :  { %v740_v58 = vpop.f32.mrb[25].mxu0 }
 0x127   :  { %575 = vst.msk [vmem:[%s1127_s3 + $0x28] sm:$0xf] %vm564_vm0, %v672_v54  ;;  %v673_v59 = vpack.c.bf16 %v449_v55, %v449_v55  ;;  %589 = vst.msk [vmem:[%s1127_s3 + $0x60] sm:$0xf] %vm564_vm0, %v686_v57  ;;  %v741_v60 = vadd.f32 %v740_v58, %v739_v56  ;;  %v742_v61 = vpop.f32.mrb[26].mxu0 }
 0x128   :  { %v743_v62 = vpop.f32.mrb[27].mxu0 }
 0x129   :  { %576 = vst.msk [vmem:[%s1127_s3 + $0x2c] sm:$0xf] %vm564_vm0, %v673_v59  ;;  %v385_v63 = vadd.f32 %v741_v60, %v997_v45  ;;  %v744_v0 = vadd.f32 %v743_v62, %v742_v61 }
 0x12b   :  { %v450_v1 = vmax.f32 %v385_v63, 0.0  ;;  %v388_v2 = vadd.f32 %v744_v0, %v997_v45 }
 0x12d   :  { %v674_v3 = vpack.c.bf16 %v450_v1, %v450_v1  ;;  %v451_v4 = vmax.f32 %v388_v2, 0.0 }
 0x12f   :  { %577 = vst.msk [vmem:[%s1127_s3 + $0x30] sm:$0xf] %vm564_vm0, %v674_v3  ;;  %v675_v5 = vpack.c.bf16 %v451_v4, %v451_v4 }
 0x131   :  { %578 = vst.msk [vmem:[%s1127_s3 + $0x34] sm:$0xf] %vm564_vm0, %v675_v5 }

// kernel: dqn_forward.5
= control target key start
LH: loop header
LB: loop body
LE: loop exit
PB: predicated region body
PF: predicated region fallthrough
CT: control target
= control target key end

     0   :  { %vm444_vm0 = vcmask 519168   ;;  %s761_s1 = inlined_call_operand.vmem [shape: bf16[512,64], index: 1, kind: input, shape index: {}]   ;;  %s762_s0 = inlined_call_operand.vmem [shape: bf16[32,512], index: 0, kind: input, shape index: {}]   ;;  %s763_s2 = inlined_call_operand.vmem [shape: f32[1,64], index: 2, kind: input, shape index: {}]   ;;  %s764_s3 = inlined_call_operand.vmem [shape: bf16[32,64], index: 3, kind: output, shape index: {}]  }
   0x1   :  { %v558_v0 = vld [vmem:[%s761_s1 + $0x40] sm:$0xff]   ;;  %v562_v4 = vld [vmem:[%s761_s1 + $0x48] sm:$0xff]   ;;  %v566_v8 = vld [vmem:[%s761_s1 + $0x50] sm:$0xff]  }
   0x2   :  { %v559_v1 = vld [vmem:[%s761_s1 + $0xc0] sm:$0xff]   ;;  %502 = vmatprep.subr.bf16.mxu0 %v558_v0  ;;  %v563_v5 = vld [vmem:[%s761_s1 + $0xc8] sm:$0xff]   ;;  %v567_v9 = vld [vmem:[%s761_s1 + $0xd0] sm:$0xff]  }
   0x3   :  { %v560_v2 = vld [vmem:[%s761_s1] sm:$0xff]   ;;  %530 = vmatprep.subr.bf16.mxu1 %v559_v1  ;;  %v564_v6 = vld [vmem:[%s761_s1 + $0x8] sm:$0xff]   ;;  %v568_v10 = vld [vmem:[%s761_s1 + $0x10] sm:$0xff]  }
   0x4   :  { %v561_v3 = vld [vmem:[%s761_s1 + $0x80] sm:$0xff]   ;;  %503 = vmatpush3.bf16.msra.mxu0 %v560_v2  ;;  %v565_v7 = vld [vmem:[%s761_s1 + $0x88] sm:$0xff]   ;;  %v569_v11 = vld [vmem:[%s761_s1 + $0x90] sm:$0xff]  }
   0x5   :  { %531 = vmatpush3.bf16.msra.mxu1 %v561_v3  ;;  %504 = vmatprep.subr.bf16.mxu0 %v562_v4  ;;  %v570_v12 = vld [vmem:[%s761_s1 + $0x58] sm:$0xff]   ;;  %v574_v16 = vld [vmem:[%s761_s1 + $0x60] sm:$0xff]   ;;  %v578_v20 = vld [vmem:[%s761_s1 + $0x68] sm:$0xff]  }
   0x6   :  { %532 = vmatprep.subr.bf16.mxu1 %v563_v5  ;;  %v571_v13 = vld [vmem:[%s761_s1 + $0xd8] sm:$0xff]   ;;  %v575_v17 = vld [vmem:[%s761_s1 + $0xe0] sm:$0xff]   ;;  %v579_v21 = vld [vmem:[%s761_s1 + $0xe8] sm:$0xff]  }
   0x7   :  { %v572_v14 = vld [vmem:[%s761_s1 + $0x18] sm:$0xff]   ;;  %v576_v18 = vld [vmem:[%s761_s1 + $0x20] sm:$0xff]   ;;  %v580_v22 = vld [vmem:[%s761_s1 + $0x28] sm:$0xff]  }
   0x8   :  { %505 = vmatpush3.bf16.msra.mxu0 %v564_v6  ;;  %v573_v15 = vld [vmem:[%s761_s1 + $0x98] sm:$0xff]   ;;  %v577_v19 = vld [vmem:[%s761_s1 + $0xa0] sm:$0xff]   ;;  %v581_v23 = vld [vmem:[%s761_s1 + $0xa8] sm:$0xff]  }
   0x9   :  { %533 = vmatpush3.bf16.msra.mxu1 %v565_v7  ;;  %506 = vmatprep.subr.bf16.mxu0 %v566_v8  ;;  %v582_v24 = vld [vmem:[%s761_s1 + $0x70] sm:$0xff]   ;;  %v586_v28 = vld [vmem:[%s761_s1 + $0x78] sm:$0xff]   ;;  %v453_v42 = vld [vmem:[%s763_s2] ss:$0 sm:$0xff] }
   0xa   :  { %534 = vmatprep.subr.bf16.mxu1 %v567_v9  ;;  %v583_v25 = vld [vmem:[%s761_s1 + $0xf0] sm:$0xff]   ;;  %v587_v29 = vld [vmem:[%s761_s1 + $0xf8] sm:$0xff]  }
   0xb   :  { %v584_v26 = vld [vmem:[%s761_s1 + $0x30] sm:$0xff]   ;;  %v588_v30 = vld [vmem:[%s761_s1 + $0x38] sm:$0xff]  }
   0xc   :  { %507 = vmatpush3.bf16.msra.mxu0 %v568_v10  ;;  %v585_v27 = vld [vmem:[%s761_s1 + $0xb0] sm:$0xff]   ;;  %v589_v31 = vld [vmem:[%s761_s1 + $0xb8] sm:$0xff]  }
   0xd   :  { %535 = vmatpush3.bf16.msra.mxu1 %v569_v11  ;;  %508 = vmatprep.subr.bf16.mxu0 %v570_v12  ;;  %v590_v32 = vld [vmem:[%s762_s0] ss:$16 sps:$4 sm:$0xff]   ;;  %v592_v33 = vld [vmem:[%s762_s0 + $0x4] ss:$16 sps:$4 sm:$0xff]   ;;  %v593_v34 = vld [vmem:[%s762_s0 + $0x8] ss:$16 sps:$4 sm:$0xff]  }
   0xe   :  { %536 = vmatprep.subr.bf16.mxu1 %v571_v13  ;;  %v595_v35 = vld [vmem:[%s762_s0 + $0xc] ss:$16 sps:$4 sm:$0xff]   ;;  %358 = vmatprep.mubr.bf16.mxu0 %v592_v33  ;;  %v596_v36 = vld [vmem:[%s762_s0 + $0x24] ss:$16 sps:$4 sm:$0xff]   ;;  %v600_v38 = vld [vmem:[%s762_s0 + $0x20] ss:$16 sps:$4 sm:$0xff]  }
   0xf   :  { %407 = vmatprep.mubr.bf16.mxu1 %v595_v35  ;;  %v598_v37 = vld [vmem:[%s762_s0 + $0x2c] ss:$16 sps:$4 sm:$0xff]   ;;  %v601_v39 = vld [vmem:[%s762_s0 + $0x28] ss:$16 sps:$4 sm:$0xff]  }
  0x10   :  { %509 = vmatpush3.bf16.msra.mxu0 %v572_v14 }
  0x11   :  { %537 = vmatpush3.bf16.msra.mxu1 %v573_v15  ;;  %510 = vmatprep.subr.bf16.mxu0 %v574_v16 }
  0x12   :  { %538 = vmatprep.subr.bf16.mxu1 %v575_v17 }
  0x14   :  { %511 = vmatpush3.bf16.msra.mxu0 %v576_v18 }
  0x15   :  { %539 = vmatpush3.bf16.msra.mxu1 %v577_v19  ;;  %512 = vmatprep.subr.bf16.mxu0 %v578_v20 }
  0x16   :  { %540 = vmatprep.subr.bf16.mxu1 %v579_v21 }
  0x18   :  { %513 = vmatpush3.bf16.msra.mxu0 %v580_v22 }
  0x19   :  { %541 = vmatpush3.bf16.msra.mxu1 %v581_v23  ;;  %514 = vmatprep.subr.bf16.mxu0 %v582_v24 }
  0x1a   :  { %542 = vmatprep.subr.bf16.mxu1 %v583_v25 }
  0x1c   :  { %515 = vmatpush3.bf16.msra.mxu0 %v584_v26 }
  0x1d   :  { %543 = vmatpush3.bf16.msra.mxu1 %v585_v27  ;;  %516 = vmatprep.subr.bf16.mxu0 %v586_v28 }
  0x1e   :  { %544 = vmatprep.subr.bf16.mxu1 %v587_v29 }
  0x20   :  { %517 = vmatpush3.bf16.msra.mxu0 %v588_v30 }
  0x21   :  { %545 = vmatpush3.bf16.msra.mxu1 %v589_v31 }
  0x23   :  { %359 = vmatmul.mubr.bf16.vlgmr.msra.gmra.mrb[0].mxu0 %v590_v32 }
  0x24   :  { %408 = vmatmul.mubr.bf16.vlgmr.msra.gmra.mrb[0].mxu1 %v593_v34  ;;  %366 = vmatprep.mubr.bf16.mxu0 %v596_v36 }
  0x25   :  { %415 = vmatprep.mubr.bf16.mxu1 %v598_v37 }
  0x2b   :  { %367 = vmatmul.mubr.bf16.gmra.mrb[4].mxu0 %v600_v38 }
  0x2c   :  { %416 = vmatmul.mubr.bf16.gmra.mrb[4].mxu1 %v601_v39 }
  0xf6   :  { %v518_v40 = vpop.f32.mrb[0].mxu0 }
  0xf7   :  { %v546_v41 = vpop.f32.mrb[0].mxu1  ;;  %v519_v43 = vpop.f32.mrb[1].mxu0 }
  0xf8   :  { %v520_v44 = vadd.f32 %v519_v43, %v518_v40  ;;  %v547_v45 = vpop.f32.mrb[1].mxu1  ;;  %v521_v46 = vpop.f32.mrb[2].mxu0 }
  0xf9   :  { %v548_v47 = vadd.f32 %v547_v45, %v546_v41  ;;  %v549_v48 = vpop.f32.mrb[2].mxu1  ;;  %v522_v49 = vpop.f32.mrb[3].mxu0 }
  0xfa   :  { %v361_v50 = vadd.f32 %v520_v44, %v453_v42  ;;  %v523_v51 = vadd.f32 %v522_v49, %v521_v46  ;;  %v550_v52 = vpop.f32.mrb[3].mxu1 }
  0xfb   :  { %v551_v53 = vadd.f32 %v550_v52, %v549_v48 }
  0xfc   :  { %v410_v54 = vadd.f32 %v548_v47, %v361_v50  ;;  %v364_v55 = vadd.f32 %v523_v51, %v453_v42 }
  0xfe   :  { %v424_v56 = vmax.f32 %v410_v54, 0.0  ;;  %v413_v57 = vadd.f32 %v551_v53, %v364_v55  ;;  %v524_v58 = vpop.f32.mrb[4].mxu0 }
  0xff   :  { %v552_v59 = vpop.f32.mrb[4].mxu1  ;;  %v525_v60 = vpop.f32.mrb[5].mxu0 }
 0x100   :  { %v498_v61 = vpack.c.bf16 %v424_v56, %v424_v56  ;;  %v425_v62 = vmax.f32 %v413_v57, 0.0  ;;  %v526_v63 = vadd.f32 %v525_v60, %v524_v58  ;;  %v553_v0 = vpop.f32.mrb[5].mxu1  ;;  %v527_v1 = vpop.f32.mrb[6].mxu0 }
 0x101   :  { %v554_v2 = vadd.f32 %v553_v0, %v552_v59  ;;  %v555_v3 = vpop.f32.mrb[6].mxu1  ;;  %v528_v4 = vpop.f32.mrb[7].mxu0 }
 0x102   :  { %445 = vst.msk [vmem:[%s764_s3] sm:$0xf] %vm444_vm0, %v498_v61  ;;  %v499_v5 = vpack.c.bf16 %v425_v62, %v425_v62  ;;  %v369_v6 = vadd.f32 %v526_v63, %v453_v42  ;;  %v529_v7 = vadd.f32 %v528_v4, %v527_v1  ;;  %v556_v8 = vpop.f32.mrb[7].mxu1 }
 0x103   :  { %v557_v9 = vadd.f32 %v556_v8, %v555_v3 }
 0x104   :  { %446 = vst.msk [vmem:[%s764_s3 + $0x4] sm:$0xf] %vm444_vm0, %v499_v5  ;;  %v418_v10 = vadd.f32 %v554_v2, %v369_v6  ;;  %v372_v11 = vadd.f32 %v529_v7, %v453_v42 }
 0x106   :  { %v426_v12 = vmax.f32 %v418_v10, 0.0  ;;  %v421_v13 = vadd.f32 %v557_v9, %v372_v11 }
 0x108   :  { %v500_v14 = vpack.c.bf16 %v426_v12, %v426_v12  ;;  %v427_v15 = vmax.f32 %v421_v13, 0.0 }
 0x10a   :  { %447 = vst.msk [vmem:[%s764_s3 + $0x8] sm:$0xf] %vm444_vm0, %v500_v14  ;;  %v501_v16 = vpack.c.bf16 %v427_v15, %v427_v15 }
 0x10c   :  { %448 = vst.msk [vmem:[%s764_s3 + $0xc] sm:$0xf] %vm444_vm0, %v501_v16 }

// kernel: dqn_forward.6
= control target key start
LH: loop header
LB: loop body
LE: loop exit
PB: predicated region body
PF: predicated region fallthrough
CT: control target
= control target key end

     0   :  { %v609_v35 = vmov 0.0   ;;  %vm610_vm0 = vmmov 0   ;;  %vm330_vm1 = vcmask 523264   ;;  %vm456_vm2 = vcmask 519168   ;;  %s754_s1 = inlined_call_operand.vmem [shape: bf16[576,64], index: 1, kind: input, shape index: {}]   ;;  %s755_s0 = inlined_call_operand.vmem [shape: bf16[8,576], index: 0, kind: input, shape index: {}]   ;;  %s756_s2 = inlined_call_operand.vmem [shape: f32[1,64], index: 2, kind: input, shape index: {}]   ;;  %s757_s3 = inlined_call_operand.vmem [shape: bf16[8,64], index: 3, kind: output, shape index: {}]  }
   0x1   :  { %v568_v0 = vld [vmem:[%s754_s1 + $0x40] sm:$0xff]   ;;  %v572_v4 = vld [vmem:[%s754_s1 + $0x48] sm:$0xff]   ;;  %v576_v8 = vld [vmem:[%s754_s1 + $0x50] sm:$0xff]  }
   0x2   :  { %v569_v1 = vld [vmem:[%s754_s1] sm:$0xff]   ;;  %505 = vmatprep.subr.bf16.mxu0 %v568_v0  ;;  %v573_v5 = vld [vmem:[%s754_s1 + $0x8] sm:$0xff]   ;;  %v577_v9 = vld [vmem:[%s754_s1 + $0x10] sm:$0xff]  }
   0x3   :  { %v570_v2 = vld [vmem:[%s754_s1 + $0xc0] sm:$0xff]   ;;  %506 = vmatpush3.bf16.msra.mxu0 %v569_v1  ;;  %v574_v6 = vld [vmem:[%s754_s1 + $0xc8] sm:$0xff]   ;;  %v578_v10 = vld [vmem:[%s754_s1 + $0xd0] sm:$0xff]  }
   0x4   :  { %v571_v3 = vld [vmem:[%s754_s1 + $0x80] sm:$0xff]   ;;  %527 = vmatprep.subr.bf16.mxu1 %v570_v2  ;;  %507 = vmatprep.subr.bf16.mxu0 %v572_v4  ;;  %v575_v7 = vld [vmem:[%s754_s1 + $0x88] sm:$0xff]   ;;  %v579_v11 = vld [vmem:[%s754_s1 + $0x90] sm:$0xff]  }
   0x5   :  { %528 = vmatpush3.bf16.msra.mxu1 %v571_v3  ;;  %v580_v12 = vld [vmem:[%s754_s1 + $0x58] sm:$0xff]   ;;  %v584_v16 = vld [vmem:[%s754_s1 + $0x60] sm:$0xff]   ;;  %v588_v20 = vld [vmem:[%s754_s1 + $0x68] sm:$0xff]  }
   0x6   :  { %529 = vmatprep.subr.bf16.mxu1 %v574_v6  ;;  %v581_v13 = vld [vmem:[%s754_s1 + $0x18] sm:$0xff]   ;;  %v585_v17 = vld [vmem:[%s754_s1 + $0x20] sm:$0xff]   ;;  %v589_v21 = vld [vmem:[%s754_s1 + $0x28] sm:$0xff]  }
   0x7   :  { %508 = vmatpush3.bf16.msra.mxu0 %v573_v5  ;;  %v582_v14 = vld [vmem:[%s754_s1 + $0xd8] sm:$0xff]   ;;  %v586_v18 = vld [vmem:[%s754_s1 + $0xe0] sm:$0xff]   ;;  %v590_v22 = vld [vmem:[%s754_s1 + $0xe8] sm:$0xff]  }
   0x8   :  { %509 = vmatprep.subr.bf16.mxu0 %v576_v8  ;;  %v583_v15 = vld [vmem:[%s754_s1 + $0x98] sm:$0xff]   ;;  %v587_v19 = vld [vmem:[%s754_s1 + $0xa0] sm:$0xff]   ;;  %v591_v23 = vld [vmem:[%s754_s1 + $0xa8] sm:$0xff]  }
   0x9   :  { %530 = vmatpush3.bf16.msra.mxu1 %v575_v7  ;;  %v592_v24 = vld [vmem:[%s754_s1 + $0x70] sm:$0xff]   ;;  %v596_v28 = vld [vmem:[%s754_s1 + $0x78] sm:$0xff]   ;;  %v15_v31 = vld [vmem:[%s755_s0] sm:$0xff] }
   0xa   :  { %531 = vmatprep.subr.bf16.mxu1 %v578_v10  ;;  %v593_v25 = vld [vmem:[%s754_s1 + $0x30] sm:$0xff]   ;;  %v597_v29 = vld [vmem:[%s754_s1 + $0x38] sm:$0xff]   ;;  %v463_v32 = vcombine.low %v15_v31, %v15_v31  ;;  %v464_v33 = vcombine.high %v15_v31, %v15_v31  ;;  %v16_v36 = vld [vmem:[%s755_s0 + $0x8] sm:$0xff] }
   0xb   :  { %510 = vmatpush3.bf16.msra.mxu0 %v577_v9  ;;  %v594_v26 = vld [vmem:[%s754_s1 + $0xf0] sm:$0xff]   ;;  %v598_v30 = vld [vmem:[%s754_s1 + $0xf8] sm:$0xff]   ;;  %v465_v37 = vcombine.low %v16_v36, %v16_v36  ;;  %v466_v38 = vcombine.high %v16_v36, %v16_v36  ;;  %v605_v39 = vld [vmem:[%s754_s1 + $0x100] sm:$0xff]  }
   0xc   :  { %511 = vmatprep.subr.bf16.mxu0 %v580_v12  ;;  %v595_v27 = vld [vmem:[%s754_s1 + $0xb0] sm:$0xff]   ;;  %v602_v34 = vld [vmem:[%s754_s1 + $0xb8] sm:$0xff]   ;;  %366 = vmatprep.mubr.bf16.mxu0 %v464_v33  ;;  %v606_v40 = vld [vmem:[%s754_s1 + $0x108] sm:$0xff]  }
   0xd   :  { %532 = vmatpush3.bf16.msra.mxu1 %v579_v11  ;;  %406 = vmatprep.mubr.bf16.mxu1 %v466_v38  ;;  %v607_v41 = vld [vmem:[%s754_s1 + $0x110] sm:$0xff]   ;;  %v608_v42 = vld [vmem:[%s754_s1 + $0x118] sm:$0xff]   ;;  %v462_v45 = vld [vmem:[%s756_s2] ss:$0 sm:$0xff] }
   0xe   :  { %533 = vmatprep.subr.bf16.mxu1 %v582_v14  ;;  %v601_v43 = vld [vmem:[%s755_s0 + $0x10] ss:$0 sps:$4 sm:$0xff]  }
   0xf   :  { %512 = vmatpush3.bf16.msra.mxu0 %v581_v13 }
  0x10   :  { %513 = vmatprep.subr.bf16.mxu0 %v584_v16 }
  0x11   :  { %534 = vmatpush3.bf16.msra.mxu1 %v583_v15 }
  0x12   :  { %535 = vmatprep.subr.bf16.mxu1 %v586_v18 }
  0x13   :  { %514 = vmatpush3.bf16.msra.mxu0 %v585_v17 }
  0x14   :  { %515 = vmatprep.subr.bf16.mxu0 %v588_v20 }
  0x15   :  { %536 = vmatpush3.bf16.msra.mxu1 %v587_v19 }
  0x16   :  { %537 = vmatprep.subr.bf16.mxu1 %v590_v22 }
  0x17   :  { %516 = vmatpush3.bf16.msra.mxu0 %v589_v21 }
  0x18   :  { %517 = vmatprep.subr.bf16.mxu0 %v592_v24 }
  0x19   :  { %538 = vmatpush3.bf16.msra.mxu1 %v591_v23 }
  0x1a   :  { %539 = vmatprep.subr.bf16.mxu1 %v594_v26 }
  0x1b   :  { %518 = vmatpush3.bf16.msra.mxu0 %v593_v25 }
  0x1c   :  { %519 = vmatprep.subr.bf16.mxu0 %v596_v28 }
  0x1d   :  { %540 = vmatpush3.bf16.msra.mxu1 %v595_v27 }
  0x1e   :  { %541 = vmatprep.subr.bf16.mxu1 %v598_v30 }
  0x1f   :  { %520 = vmatpush3.bf16.msra.mxu0 %v597_v29 }
  0x20   :  { %554 = vmatprep.subr.bf16.mxu0 %v609_v35 }
  0x21   :  { %542 = vmatpush3.bf16.msra.mxu1 %v602_v34 }
  0x22   :  { %367 = vmatmul.mubr.bf16.vlgmr.msra.gmra.mrb[0].mxu0 %v463_v32 }
  0x23   :  { %555 = vmatpush3.bf16.msra.mxu0 %v605_v39  ;;  %562 = vmatprep.mubr.msk.bf16.mxu0 %vm610_vm0, %v609_v35 }
  0x24   :  { %407 = vmatmul.mubr.bf16.vlgmr.msra.gmra.mrb[0].mxu1 %v465_v37  ;;  %556 = vmatprep.subr.bf16.mxu0 %v609_v35 }
  0x27   :  { %557 = vmatpush3.bf16.msra.mxu0 %v606_v40 }
  0x28   :  { %558 = vmatprep.subr.bf16.mxu0 %v609_v35 }
  0x2b   :  { %559 = vmatpush3.bf16.msra.mxu0 %v607_v41 }
  0x2c   :  { %560 = vmatprep.subr.bf16.mxu0 %v609_v35 }
  0x2f   :  { %561 = vmatpush3.bf16.msra.mxu0 %v608_v42 }
  0x32   :  { %563 = vmatmul.mubr.msk.bf16.vlgmr.msra.gmra.mrb[4].mxu0 %vm330_vm1, %v601_v43 }
  0xf5   :  { %v521_v44 = vpop.f32.mrb[0].mxu0 }
  0xf6   :  { %v522_v46 = vpop.f32.mrb[1].mxu0 }
  0xf7   :  { %v523_v47 = vadd.f32 %v522_v46, %v521_v44  ;;  %v524_v48 = vpop.f32.mrb[2].mxu0  ;;  %v543_v49 = vpop.f32.mrb[0].mxu1 }
  0xf8   :  { %v525_v50 = vpop.f32.mrb[3].mxu0  ;;  %v544_v51 = vpop.f32.mrb[1].mxu1 }
  0xf9   :  { %v369_v52 = vadd.f32 %v523_v47, %v462_v45  ;;  %v545_v53 = vadd.f32 %v544_v51, %v543_v49  ;;  %v546_v54 = vpop.f32.mrb[2].mxu1 }
  0xfa   :  { %v547_v55 = vpop.f32.mrb[3].mxu1 }
  0xfb   :  { %v409_v56 = vadd.f32 %v545_v53, %v369_v52 }
 0x105   :  { %v448_v57 = vpop.f32.mrb[4].mxu0 }
 0x106   :  { %v449_v58 = vadd.f32 %v448_v57, %v409_v56  ;;  %v564_v59 = vpop.f32.mrb[5].mxu0 }
 0x107   :  { %v451_v60 = vpop.f32.mrb[6].mxu0 }
 0x108   :  { %v454_v61 = vmax.f32 %v449_v58, 0.0  ;;  %v565_v62 = vpop.f32.mrb[7].mxu0 }
 0x10a   :  { %v455_v63 = vpack.c.bf16 %v454_v61, %v454_v61 }
 0x10c   :  { %457 = vst.msk [vmem:[%s757_s3] sm:$0xf] %vm456_vm2, %v455_v63 }

// kernel: dqn_forward.7
= control target key start
LH: loop header
LB: loop body
LE: loop exit
PB: predicated region body
PF: predicated region fallthrough
CT: control target
= control target key end

     0   :  { %v89_v38 = vlaneseq  ;;  %v1198_v39 = vmov 1966171168   ;;  %s1546_s0 = inlined_call_operand.vmem [shape: bf16[2,256], index: 0, kind: input, shape index: {}]   ;;  %s1547_s1 = inlined_call_operand.vmem [shape: bf16[256,512], index: 1, kind: input, shape index: {}]   ;;  %s1548_s2 = inlined_call_operand.vmem [shape: f32[1,512], index: 2, kind: input, shape index: {}]   ;;  %s1549_s3 = inlined_call_operand.vmem [shape: bf16[512,128], index: 3, kind: input, shape index: {}]   ;;  %s1550_s4 = inlined_call_operand.vmem [shape: f32[1,128], index: 4, kind: input, shape index: {}]   ;;  %s1551_s5 = inlined_call_operand.hbm [shape: f32[2,128], index: 5, kind: output, shape index: {}]  }
   0x1   :  { %v1046_v0 = vld [vmem:[%s1547_s1 + $0x4] ss:$16 sps:$4 sm:$0xff]   ;;  %v1048_v1 = vld [vmem:[%s1547_s1 + $0xc] ss:$16 sps:$4 sm:$0xff]   ;;  %v1050_v2 = vld [vmem:[%s1547_s1] ss:$16 sps:$4 sm:$0xff]   ;;  %v119_v40 = vunpack.c.l.s4 %v1198_v39 }
   0x2   :  { %454 = vmatprep.subr.bf16.mxu0 %v1046_v0  ;;  %v1051_v3 = vld [vmem:[%s1547_s1 + $0x8] ss:$16 sps:$4 sm:$0xff]   ;;  %495 = vmatprep.subr.bf16.mxu1 %v1048_v1  ;;  %v1052_v4 = vld [vmem:[%s1547_s1 + $0x24] ss:$16 sps:$4 sm:$0xff]   ;;  %v1054_v5 = vld [vmem:[%s1547_s1 + $0x2c] ss:$16 sps:$4 sm:$0xff]  }
   0x3   :  { %455 = vmatpush1.bf16.msra.mxu0 %v1050_v2  ;;  %496 = vmatpush1.bf16.msra.mxu1 %v1051_v3  ;;  %v1056_v6 = vld [vmem:[%s1547_s1 + $0x20] ss:$16 sps:$4 sm:$0xff]   ;;  %v1057_v7 = vld [vmem:[%s1547_s1 + $0x28] ss:$16 sps:$4 sm:$0xff]   ;;  %v1058_v8 = vld [vmem:[%s1547_s1 + $0x44] ss:$16 sps:$4 sm:$0xff]   ;;  %v120_v46 = vunpack.c.0.s8 %v119_v40 }
   0x4   :  { %456 = vmatprep.subr.bf16.mxu0 %v1052_v4  ;;  %497 = vmatprep.subr.bf16.mxu1 %v1054_v5  ;;  %v1060_v9 = vld [vmem:[%s1547_s1 + $0x4c] ss:$16 sps:$4 sm:$0xff]   ;;  %v1062_v10 = vld [vmem:[%s1547_s1 + $0x40] ss:$16 sps:$4 sm:$0xff]   ;;  %v1063_v11 = vld [vmem:[%s1547_s1 + $0x48] ss:$16 sps:$4 sm:$0xff]  }
   0x5   :  { %v1064_v12 = vld [vmem:[%s1547_s1 + $0x64] ss:$16 sps:$4 sm:$0xff]   ;;  %v1066_v13 = vld [vmem:[%s1547_s1 + $0x6c] ss:$16 sps:$4 sm:$0xff]   ;;  %v1068_v14 = vld [vmem:[%s1547_s1 + $0x60] ss:$16 sps:$4 sm:$0xff]  }
   0x6   :  { %v1069_v15 = vld [vmem:[%s1547_s1 + $0x68] ss:$16 sps:$4 sm:$0xff]   ;;  %v1070_v16 = vld [vmem:[%s1547_s1 + $0x84] ss:$16 sps:$4 sm:$0xff]   ;;  %v1072_v17 = vld [vmem:[%s1547_s1 + $0x8c] ss:$16 sps:$4 sm:$0xff]  }
   0x7   :  { %457 = vmatpush1.bf16.msra.mxu0 %v1056_v6  ;;  %498 = vmatpush1.bf16.msra.mxu1 %v1057_v7  ;;  %v1074_v18 = vld [vmem:[%s1547_s1 + $0x80] ss:$16 sps:$4 sm:$0xff]   ;;  %v1075_v19 = vld [vmem:[%s1547_s1 + $0x88] ss:$16 sps:$4 sm:$0xff]   ;;  %v1076_v20 = vld [vmem:[%s1547_s1 + $0xa4] ss:$16 sps:$4 sm:$0xff]  }
   0x8   :  { %458 = vmatprep.subr.bf16.mxu0 %v1058_v8  ;;  %499 = vmatprep.subr.bf16.mxu1 %v1060_v9  ;;  %v1078_v21 = vld [vmem:[%s1547_s1 + $0xac] ss:$16 sps:$4 sm:$0xff]   ;;  %v1080_v22 = vld [vmem:[%s1547_s1 + $0xa0] ss:$16 sps:$4 sm:$0xff]   ;;  %v1081_v23 = vld [vmem:[%s1547_s1 + $0xa8] ss:$16 sps:$4 sm:$0xff]  }
   0x9   :  { %v1082_v24 = vld [vmem:[%s1547_s1 + $0xc4] ss:$16 sps:$4 sm:$0xff]   ;;  %v1084_v25 = vld [vmem:[%s1547_s1 + $0xcc] ss:$16 sps:$4 sm:$0xff]   ;;  %v1086_v26 = vld [vmem:[%s1547_s1 + $0xc0] ss:$16 sps:$4 sm:$0xff]  }
   0xa   :  { %v1087_v27 = vld [vmem:[%s1547_s1 + $0xc8] ss:$16 sps:$4 sm:$0xff]   ;;  %v1088_v28 = vld [vmem:[%s1547_s1 + $0xe4] ss:$16 sps:$4 sm:$0xff]   ;;  %v1090_v29 = vld [vmem:[%s1547_s1 + $0xec] ss:$16 sps:$4 sm:$0xff]  }
   0xb   :  { %459 = vmatpush1.bf16.msra.mxu0 %v1062_v10  ;;  %500 = vmatpush1.bf16.msra.mxu1 %v1063_v11  ;;  %v1092_v30 = vld [vmem:[%s1547_s1 + $0xe0] ss:$16 sps:$4 sm:$0xff]   ;;  %v1093_v31 = vld [vmem:[%s1547_s1 + $0xe8] ss:$16 sps:$4 sm:$0xff]   ;;  %v1094_v32 = vld [vmem:[%s1547_s1 + $0x104] ss:$16 sps:$4 sm:$0xff]  }
   0xc   :  { %460 = vmatprep.subr.bf16.mxu0 %v1064_v12  ;;  %501 = vmatprep.subr.bf16.mxu1 %v1066_v13  ;;  %v1096_v33 = vld [vmem:[%s1547_s1 + $0x10c] ss:$16 sps:$4 sm:$0xff]   ;;  %v1098_v34 = vld [vmem:[%s1547_s1 + $0x100] ss:$16 sps:$4 sm:$0xff]   ;;  %v1099_v35 = vld [vmem:[%s1547_s1 + $0x108] ss:$16 sps:$4 sm:$0xff]  }
   0xd   :  { %v1100_v36 = vld [vmem:[%s1547_s1 + $0x124] ss:$16 sps:$4 sm:$0xff]   ;;  %v1102_v37 = vld [vmem:[%s1547_s1 + $0x12c] ss:$16 sps:$4 sm:$0xff]   ;;  %v1104_v41 = vld [vmem:[%s1547_s1 + $0x120] ss:$16 sps:$4 sm:$0xff]  }
   0xe   :  { %v1105_v42 = vld [vmem:[%s1547_s1 + $0x128] ss:$16 sps:$4 sm:$0xff]   ;;  %v1106_v43 = vld [vmem:[%s1547_s1 + $0x144] ss:$16 sps:$4 sm:$0xff]   ;;  %v1108_v44 = vld [vmem:[%s1547_s1 + $0x14c] ss:$16 sps:$4 sm:$0xff]  }
   0xf   :  { %461 = vmatpush1.bf16.msra.mxu0 %v1068_v14  ;;  %502 = vmatpush1.bf16.msra.mxu1 %v1069_v15  ;;  %v1356_v45 = vshrl.u32 %v89_v38, 7  ;;  %v1110_v47 = vld [vmem:[%s1547_s1 + $0x140] ss:$16 sps:$4 sm:$0xff]   ;;  %v1111_v48 = vld [vmem:[%s1547_s1 + $0x148] ss:$16 sps:$4 sm:$0xff]  }
  0x10   :  { %462 = vmatprep.subr.bf16.mxu0 %v1070_v16  ;;  %503 = vmatprep.subr.bf16.mxu1 %v1072_v17  ;;  %v1112_v49 = vld [vmem:[%s1547_s1 + $0x164] ss:$16 sps:$4 sm:$0xff]   ;;  %v1114_v50 = vld [vmem:[%s1547_s1 + $0x16c] ss:$16 sps:$4 sm:$0xff]   ;;  %v1116_v51 = vld [vmem:[%s1547_s1 + $0x160] ss:$16 sps:$4 sm:$0xff]  }
  0x11   :  { %v1117_v52 = vld [vmem:[%s1547_s1 + $0x168] ss:$16 sps:$4 sm:$0xff]   ;;  %v123_v53 = vsub.s32 %v120_v46, %v1356_v45  ;;  %v902_v54 = vld.sshfl [vmem:[%s1546_s0] sm:$0x11 pattern:$0x75316420] }
  0x12   :  { %v1118_v55 = vld [vmem:[%s1547_s1 + $0x184] ss:$16 sps:$4 sm:$0xff]   ;;  %v117_v56 = vcombine.high %v902_v54, %v902_v54  ;;  %v1120_v57 = vld [vmem:[%s1547_s1 + $0x18c] ss:$16 sps:$4 sm:$0xff]   ;;  %v1122_v58 = vld [vmem:[%s1547_s1 + $0x180] ss:$16 sps:$4 sm:$0xff]  }
  0x13   :  { %463 = vmatpush1.bf16.msra.mxu0 %v1074_v18  ;;  %504 = vmatpush1.bf16.msra.mxu1 %v1075_v19  ;;  %v1123_v60 = vld [vmem:[%s1547_s1 + $0x188] ss:$16 sps:$4 sm:$0xff]   ;;  %v1124_v61 = vld [vmem:[%s1547_s1 + $0x1a4] ss:$16 sps:$4 sm:$0xff]   ;;  %v1126_v62 = vld [vmem:[%s1547_s1 + $0x1ac] ss:$16 sps:$4 sm:$0xff]   ;;  %v124_v12 = vrot.slane %v902_v54, %v123_v53 }
  0x14   :  { %464 = vmatprep.subr.bf16.mxu0 %v1076_v20  ;;  %505 = vmatprep.subr.bf16.mxu1 %v1078_v21  ;;  %v131_v59 = vrot.slane %v117_v56, %v123_v53  ;;  %v1128_v63 = vld [vmem:[%s1547_s1 + $0x1a0] ss:$16 sps:$4 sm:$0xff]   ;;  %v1129_v0 = vld [vmem:[%s1547_s1 + $0x1a8] ss:$16 sps:$4 sm:$0xff]   ;;  %v1130_v1 = vld [vmem:[%s1547_s1 + $0x1c4] ss:$16 sps:$4 sm:$0xff]  }
  0x15   :  { %v1132_v2 = vld [vmem:[%s1547_s1 + $0x1cc] ss:$16 sps:$4 sm:$0xff]   ;;  %v1134_v3 = vld [vmem:[%s1547_s1 + $0x1c0] ss:$16 sps:$4 sm:$0xff]   ;;  %v1135_v4 = vld [vmem:[%s1547_s1 + $0x1c8] ss:$16 sps:$4 sm:$0xff]  }
  0x16   :  { %486 = vmatprep.mubr.bf16.mxu0 %v131_v59  ;;  %527 = vmatprep.mubr.bf16.mxu1 %v131_v59  ;;  %v1136_v5 = vld [vmem:[%s1547_s1 + $0x1e4] ss:$16 sps:$4 sm:$0xff]   ;;  %v1138_v6 = vld [vmem:[%s1547_s1 + $0x1ec] ss:$16 sps:$4 sm:$0xff]   ;;  %v1140_v7 = vld [vmem:[%s1547_s1 + $0x1e0] ss:$16 sps:$4 sm:$0xff]  }
  0x17   :  { %465 = vmatpush1.bf16.msra.mxu0 %v1080_v22  ;;  %506 = vmatpush1.bf16.msra.mxu1 %v1081_v23  ;;  %v1141_v8 = vld [vmem:[%s1547_s1 + $0x1e8] ss:$16 sps:$4 sm:$0xff]   ;;  %v1142_v9 = vld [vmem:[%s1549_s3 + $0x40] sm:$0xff]   ;;  %v1150_v18 = vld [vmem:[%s1549_s3 + $0x50] sm:$0xff]  }
  0x18   :  { %466 = vmatprep.subr.bf16.mxu0 %v1082_v24  ;;  %507 = vmatprep.subr.bf16.mxu1 %v1084_v25  ;;  %v1143_v10 = vld [vmem:[%s1549_s3 + $0xc0] sm:$0xff]   ;;  %v1146_v14 = vld [vmem:[%s1549_s3 + $0x48] sm:$0xff]   ;;  %v1151_v19 = vld [vmem:[%s1549_s3 + $0xd0] sm:$0xff]  }
  0x19   :  { %v1144_v11 = vld [vmem:[%s1549_s3] sm:$0xff]   ;;  %v1147_v15 = vld [vmem:[%s1549_s3 + $0xc8] sm:$0xff]   ;;  %v1152_v20 = vld [vmem:[%s1549_s3 + $0x10] sm:$0xff]  }
  0x1a   :  { %v1145_v13 = vld [vmem:[%s1549_s3 + $0x80] sm:$0xff]   ;;  %v1148_v16 = vld [vmem:[%s1549_s3 + $0x8] sm:$0xff]   ;;  %v1153_v21 = vld [vmem:[%s1549_s3 + $0x90] sm:$0xff]  }
  0x1b   :  { %467 = vmatpush1.bf16.msra.mxu0 %v1086_v26  ;;  %508 = vmatpush1.bf16.msra.mxu1 %v1087_v27  ;;  %v1149_v17 = vld [vmem:[%s1549_s3 + $0x88] sm:$0xff]   ;;  %v1154_v22 = vld [vmem:[%s1549_s3 + $0x58] sm:$0xff]  }
  0x1c   :  { %468 = vmatprep.subr.bf16.mxu0 %v1088_v28  ;;  %509 = vmatprep.subr.bf16.mxu1 %v1090_v29  ;;  %v1155_v23 = vld [vmem:[%s1549_s3 + $0xd8] sm:$0xff]  }
  0x1f   :  { %469 = vmatpush1.bf16.msra.mxu0 %v1092_v30  ;;  %510 = vmatpush1.bf16.msra.mxu1 %v1093_v31 }
  0x20   :  { %470 = vmatprep.subr.bf16.mxu0 %v1094_v32  ;;  %511 = vmatprep.subr.bf16.mxu1 %v1096_v33 }
  0x23   :  { %471 = vmatpush1.bf16.msra.mxu0 %v1098_v34  ;;  %512 = vmatpush1.bf16.msra.mxu1 %v1099_v35 }
  0x24   :  { %472 = vmatprep.subr.bf16.mxu0 %v1100_v36  ;;  %513 = vmatprep.subr.bf16.mxu1 %v1102_v37 }
  0x27   :  { %473 = vmatpush1.bf16.msra.mxu0 %v1104_v41  ;;  %514 = vmatpush1.bf16.msra.mxu1 %v1105_v42 }
  0x28   :  { %474 = vmatprep.subr.bf16.mxu0 %v1106_v43  ;;  %515 = vmatprep.subr.bf16.mxu1 %v1108_v44 }
  0x2b   :  { %475 = vmatpush1.bf16.msra.mxu0 %v1110_v47  ;;  %516 = vmatpush1.bf16.msra.mxu1 %v1111_v48 }
  0x2c   :  { %476 = vmatprep.subr.bf16.mxu0 %v1112_v49  ;;  %517 = vmatprep.subr.bf16.mxu1 %v1114_v50 }
  0x2f   :  { %477 = vmatpush1.bf16.msra.mxu0 %v1116_v51  ;;  %518 = vmatpush1.bf16.msra.mxu1 %v1117_v52 }
  0x30   :  { %478 = vmatprep.subr.bf16.mxu0 %v1118_v55  ;;  %519 = vmatprep.subr.bf16.mxu1 %v1120_v57 }
  0x33   :  { %479 = vmatpush1.bf16.msra.mxu0 %v1122_v58  ;;  %520 = vmatpush1.bf16.msra.mxu1 %v1123_v60 }
  0x34   :  { %480 = vmatprep.subr.bf16.mxu0 %v1124_v61  ;;  %521 = vmatprep.subr.bf16.mxu1 %v1126_v62 }
  0x37   :  { %481 = vmatpush1.bf16.msra.mxu0 %v1128_v63  ;;  %522 = vmatpush1.bf16.msra.mxu1 %v1129_v0 }
  0x38   :  { %482 = vmatprep.subr.bf16.mxu0 %v1130_v1  ;;  %523 = vmatprep.subr.bf16.mxu1 %v1132_v2 }
  0x3b   :  { %483 = vmatpush1.bf16.msra.mxu0 %v1134_v3  ;;  %524 = vmatpush1.bf16.msra.mxu1 %v1135_v4 }
  0x3c   :  { %484 = vmatprep.subr.bf16.mxu0 %v1136_v5  ;;  %525 = vmatprep.subr.bf16.mxu1 %v1138_v6 }
  0x3f   :  { %485 = vmatpush1.bf16.msra.mxu0 %v1140_v7  ;;  %526 = vmatpush1.bf16.msra.mxu1 %v1141_v8 }
  0x40   :  { %1000 = vmatprep.subr.bf16.mxu0 %v1142_v9  ;;  %1022 = vmatprep.subr.bf16.mxu1 %v1143_v10 }
  0x42   :  { %487 = vmatmul.mubr.bf16.vlgmr.msra.gmra.mrb[0].mxu0 %v124_v12  ;;  %528 = vmatmul.mubr.bf16.vlgmr.msra.gmra.mrb[0].mxu1 %v124_v12 }
  0x43   :  { %1001 = vmatpush3.bf16.msra.mxu0 %v1144_v11  ;;  %1023 = vmatpush3.bf16.msra.mxu1 %v1145_v13 }
  0x44   :  { %1002 = vmatprep.subr.bf16.mxu0 %v1146_v14  ;;  %1024 = vmatprep.subr.bf16.mxu1 %v1147_v15 }
  0x47   :  { %1003 = vmatpush3.bf16.msra.mxu0 %v1148_v16  ;;  %1025 = vmatpush3.bf16.msra.mxu1 %v1149_v17 }
  0x48   :  { %1004 = vmatprep.subr.bf16.mxu0 %v1150_v18  ;;  %1026 = vmatprep.subr.bf16.mxu1 %v1151_v19 }
  0x49   :  { %10 = vsyncpa [#allocation3], 0  ;;  %v1156_v24 = vld [vmem:[%s1549_s3 + $0x18] sm:$0xff]   ;;  %v1158_v26 = vld [vmem:[%s1549_s3 + $0x60] sm:$0xff]   ;;  %v91_v42 = vsub.s32 0, %v1356_v45  ;;  %v99_v43 = vsub.s32 2, %v1356_v45 }
  0x4a   :  { %v1157_v25 = vld [vmem:[%s1549_s3 + $0x98] sm:$0xff]   ;;  %v1159_v27 = vld [vmem:[%s1549_s3 + $0xe0] sm:$0xff]   ;;  %v1162_v30 = vld [vmem:[%s1549_s3 + $0x68] sm:$0xff]   ;;  %v95_v46 = vsub.s32 1, %v1356_v45  ;;  %v103_v47 = vsub.s32 3, %v1356_v45  ;;  %s1199_s7 = smov [#allocation2]  }
  0x4b   :  { %1005 = vmatpush3.bf16.msra.mxu0 %v1152_v20  ;;  %1027 = vmatpush3.bf16.msra.mxu1 %v1153_v21  ;;  %v1160_v28 = vld [vmem:[%s1549_s3 + $0x20] sm:$0xff]   ;;  %v1163_v31 = vld [vmem:[%s1549_s3 + $0xe8] sm:$0xff]   ;;  %v1166_v34 = vld [vmem:[%s1549_s3 + $0x70] sm:$0xff]   ;;  %s894_s8 = sshll.u32 %s1199_s7, 4  ;;  %s895_s8 = int_to_ptr.vmem [resolvable:$true] %s894_s8 }
  0x4c   :  { %1006 = vmatprep.subr.bf16.mxu0 %v1154_v22  ;;  %1028 = vmatprep.subr.bf16.mxu1 %v1155_v23  ;;  %v1161_v29 = vld [vmem:[%s1549_s3 + $0xa0] sm:$0xff]   ;;  %v1164_v32 = vld [vmem:[%s1549_s3 + $0x28] sm:$0xff]   ;;  %v1167_v35 = vld [vmem:[%s1549_s3 + $0xf0] sm:$0xff]   ;;  %s1174_s9 = scalar_lea.vmem %s895_s8, 32  ;;  %p1179_p1 = scmp.lt.s32.totalorder %s895_s8, %s895_s8 }
  0x4d   :  { %v1165_v33 = vld [vmem:[%s1549_s3 + $0xa8] sm:$0xff]   ;;  %v1168_v36 = vld [vmem:[%s1549_s3 + $0x30] sm:$0xff]   ;;  %v1170_v38 = vld [vmem:[%s1549_s3 + $0x78] sm:$0xff]   ;;  %p1175_p0 = scmp.ne.s32.totalorder %s895_s8, %s1174_s9  ;;  %p1180_p2 = scmp.lt.s32.totalorder %s1174_s9, %s1174_s9 }
  0x4e   :  { %v1169_v37 = vld [vmem:[%s1549_s3 + $0xb0] sm:$0xff]   ;;  %v1171_v39 = vld [vmem:[%s1549_s3 + $0xf8] sm:$0xff]   ;;  %v87_v44 = vld [vmem:[%s1548_s2] sm:$0xf] }
  0x4f   :  { %1007 = vmatpush3.bf16.msra.mxu0 %v1156_v24  ;;  %1029 = vmatpush3.bf16.msra.mxu1 %v1157_v25  ;;  %v1172_v40 = vld [vmem:[%s1549_s3 + $0x38] sm:$0xff]   ;;  %v92_v48 = vrot.slane %v87_v44, %v91_v42  ;;  %v100_v49 = vrot.slane %v87_v44, %v99_v43  ;;  %v96_v50 = vrot.slane %v87_v44, %v95_v46  ;;  %v967_v9 = vld [vmem:[%s1550_s4] ss:$0 sm:$0xff]  ;;  %p1181_p3 = por %p1180_p2, %p1179_p1 }
  0x50   :  { %1008 = vmatprep.subr.bf16.mxu0 %v1158_v26  ;;  %1030 = vmatprep.subr.bf16.mxu1 %v1159_v27  ;;  %v1173_v41 = vld [vmem:[%s1549_s3 + $0xb8] sm:$0xff]   ;;  %v104_v51 = vrot.slane %v87_v44, %v103_v47 }
  0x51   :  { %p1182_p4 = pnand %p1181_p3, %p1175_p0 }
  0x53   :  { %1009 = vmatpush3.bf16.msra.mxu0 %v1160_v28  ;;  %1031 = vmatpush3.bf16.msra.mxu1 %v1161_v29 }
  0x54   :  { %1010 = vmatprep.subr.bf16.mxu0 %v1162_v30  ;;  %1032 = vmatprep.subr.bf16.mxu1 %v1163_v31 }
  0x57   :  { %1011 = vmatpush3.bf16.msra.mxu0 %v1164_v32  ;;  %1033 = vmatpush3.bf16.msra.mxu1 %v1165_v33 }
  0x58   :  { %1012 = vmatprep.subr.bf16.mxu0 %v1166_v34  ;;  %1034 = vmatprep.subr.bf16.mxu1 %v1167_v35 }
  0x5b   :  { %1013 = vmatpush3.bf16.msra.mxu0 %v1168_v36  ;;  %1035 = vmatpush3.bf16.msra.mxu1 %v1169_v37 }
  0x5c   :  { %1014 = vmatprep.subr.bf16.mxu0 %v1170_v38  ;;  %1036 = vmatprep.subr.bf16.mxu1 %v1171_v39 }
  0x5f   :  { %1015 = vmatpush3.bf16.msra.mxu0 %v1172_v40  ;;  %1037 = vmatpush3.bf16.msra.mxu1 %v1173_v41 }
 0x115   :  { %v488_v52 = vpop.f32.mrb[0].mxu0  ;;  %v529_v53 = vpop.f32.mrb[0].mxu1 }
 0x116   :  { %v489_v54 = vadd.f32 %v488_v52, %v92_v48  ;;  %v530_v55 = vadd.f32 %v529_v53, %v100_v49  ;;  %v490_v56 = vpop.f32.mrb[1].mxu0  ;;  %v531_v57 = vpop.f32.mrb[1].mxu1 }
 0x117   :  { %v491_v58 = vadd.f32 %v490_v56, %v96_v50  ;;  %v532_v59 = vadd.f32 %v531_v57, %v104_v51  ;;  %v492_v60 = vpop.f32.mrb[2].mxu0  ;;  %v533_v61 = vpop.f32.mrb[2].mxu1 }
 0x118   :  { %v536_v62 = vmax.f32 %v489_v54, 0.0  ;;  %v538_v63 = vmax.f32 %v530_v55, 0.0  ;;  %v493_v0 = vpop.f32.mrb[3].mxu0  ;;  %v534_v1 = vpop.f32.mrb[3].mxu1 }
 0x119   :  { %v537_v2 = vmax.f32 %v491_v58, 0.0  ;;  %v539_v45 = vmax.f32 %v532_v59, 0.0 }
 0x11a   :  { %v542_v3 = vpack.c.bf16 %v538_v63, %v538_v63  ;;  %v540_v6 = vpack.c.bf16 %v536_v62, %v536_v62 }
 0x11b   :  { %v541_v4 = vpack.c.bf16 %v537_v2, %v537_v2  ;;  %v543_v5 = vpack.c.bf16 %v539_v45, %v539_v45 }
 0x11d   :  { %839 = vmatprep.mubr.bf16.mxu0 %v541_v4  ;;  %879 = vmatprep.mubr.bf16.mxu1 %v543_v5 }
 0x11e   :  { %840 = vmatmul.mubr.bf16.vlgmr.msra.gmra.mrb[4].mxu0 %v540_v6  ;;  %880 = vmatmul.mubr.bf16.vlgmr.msra.gmra.mrb[4].mxu1 %v542_v3 }
 0x1f1   :  { %v1016_v7 = vpop.f32.mrb[4].mxu0  ;;  %v1038_v8 = vpop.f32.mrb[4].mxu1 }
 0x1f2   :  { %v1017_v10 = vpop.f32.mrb[5].mxu0  ;;  %v1039_v11 = vpop.f32.mrb[5].mxu1 }
 0x1f3   :  { %v1018_v12 = vadd.f32 %v1017_v10, %v1016_v7  ;;  %v1040_v13 = vadd.f32 %v1039_v11, %v1038_v8  ;;  %v1019_v14 = vpop.f32.mrb[6].mxu0  ;;  %v1041_v15 = vpop.f32.mrb[6].mxu1 }
 0x1f4   :  { %v1020_v16 = vpop.f32.mrb[7].mxu0  ;;  %v1042_v17 = vpop.f32.mrb[7].mxu1 }
 0x1f5   :  { %v842_v18 = vadd.f32 %v1018_v12, %v967_v9 }
 0x1f7   :  { %v882_v19 = vadd.f32 %v1040_v13, %v842_v18 }
 0x1f9   :  { %887 = vst [vmem:[#allocation2] sm:$0x3] %v882_v19 }
 0x1fa   :  { %1185 = shalt.err (!%p1182_p4)
}
 0x1fb   :  { %s1186_s11 = scalar_lea.hbm %s1551_s5, 32 }
 0x1fc   :  { %p1187_p5 = scmp.ne.s32.totalorder %s1551_s5, %s1186_s11  ;;  %p1190_p6 = scmp.lt.u32.totalorder %s1186_s11, %s1551_s5 }
 0x1fe   :  { %p1192_p7 = pnand %p1190_p6, %p1187_p5 }
 0x200   :  { %1195 = shalt.err (!%p1192_p7)
}
 0x201   :  { %897 = dma.vmem_to_hbm [thread:$0]  %s895_s8, 32, %s1551_s5, [#allocation3]  }
 0x202   :  { %1196 = dma.done.wait [#allocation3], 32  }
 0x203   :  { %1197 = vsyncadd [#allocation3], 4294967264 }
 0x204   :  { %901 = vsyncpa [#allocation3], 1 }

</bundles_post_ra>
